<compile_context>
chip_gen: v5e
topology: v5e:2x2
jax: 0.10.0
libtpu: 0.0.40
codegen_flags: <defaults>
</compile_context>

<pallas_src>
import functools

import jax
import jax.numpy as jnp
import numpy as np
from jax.experimental import pallas as pl
from jax.experimental.pallas import tpu as pltpu


# ----------------------------------------------------------------------------
# Fused kernel: GATv2 temporal attention (whole batch) + BatchNorm1d
# ----------------------------------------------------------------------------
def _fused_temporal_attention_bn_kernel(
    xT_ref,      # (F, BK)     feature-major input  x^T
    w12_ref,     # (2E, F)     stacked [W1; W2] (torch Linear weight split)
    ba_ref,      # (2E, 1)     [linear bias ; attention vector a]
    bias_ref,    # (BK, BK)    block-diagonal attention bias, off-diag = -1e30
    bn_ref,      # (2F, 1)     [bn gamma ; bn beta]
    out_ref,     # (F, BK)     feature-major output
    *, alpha, eps, E, F):
    """GATv2 identity:  lin(concat(x_i, x_j)) = W1 x_i + W2 x_j + b,
    so the (K, K, 2F) concat tensor of the PyTorch reference is never built."""
    xT = xT_ref[...]                 # (F, BK)
    ba = ba_ref[...]                 # (2E, 1)
    bn = bn_ref[...]                 # (2F, 1)

    # Single fused projection: [W1; W2] @ x^T -> (2E, BK) on the (idle) MXU.
    uv = jnp.dot(w12_ref[...], xT, preferred_element_type=jnp.float32)
    u = uv[:E] + ba[:E]              # (E, BK)  sublane-aligned slice + bias
    v = uv[E:]                       # (E, BK)
    a3 = ba[E:].reshape(E, 1, 1)     # attention vector, hoisted broadcast

    # z[c, i, j] = u[c, i] + v[c, j];  LeakyReLU;  e[i, j] = sum_c a[c] z[c,i,j].
    z = u[:, :, None] + v[:, None, :]                 # (E, BK, BK)
    z = jnp.where(z >= 0, z, alpha * z)               # LeakyReLU
    e = jnp.sum(a3 * z, axis=0) + bias_ref[...]       # (BK, BK)

    # Row softmax.  Off-diagonal-block entries carry -1e30 so exp underflows to
    # exactly 0 and the single big softmax equals the per-batch softmax.
    m = jnp.max(e, axis=-1, keepdims=True)
    p = jnp.exp(e - m)
    l = jnp.sum(p, axis=-1, keepdims=True)
    attn = p / l                     # exact divide (fixes previous tolerance fail)

    # TODO(synk): dropout on `attn` (p > 0, training) not implemented; the
    # reference run uses dropout = 0.0 for which torch.dropout is the identity.

    # h^T[f, i] = sum_j attn[i, j] * x[j, f]   (masked entries contribute 0).
    hT = jax.lax.dot_general(xT, attn, (((1,), (1,)), ((), ())),
                             preferred_element_type=jnp.float32)   # (F, BK)

    # BatchNorm1d, training mode (biased batch statistics), feature-major.
    # TODO(synk): running_mean / running_var momentum updates are omitted.
    mean = jnp.mean(hT, axis=1, keepdims=True)
    var = jnp.mean(jnp.square(hT - mean), axis=1, keepdims=True)
    gamma = bn[:F]                   # (F, 1)
    beta = bn[F:]                    # (F, 1)
    out_ref[...] = (hT - mean) * jax.lax.rsqrt(var + eps) * gamma + beta


# ----------------------------------------------------------------------------
# Wrapper: parameter packing / layout plumbing + single pallas_call
# ----------------------------------------------------------------------------
def temporal_attention_forward(x, params, *, alpha=0.2, bn_eps=1e-5):
    B, K, F = x.shape
    lin_w = params["lin_w"]            # (E, 2F)  torch Linear weight (out, in)
    lin_b = params["lin_b"]            # (E,)
    a = params["a"]                    # (E, 1)
    att_bias = params["att_bias"]      # (K, K)
    gamma = params["bn_gamma"]         # (F,)
    beta = params["bn_beta"]           # (F,)
    E = lin_w.shape[0]
    BK = B * K
    f32 = jnp.float32

    # Stacked projection weight [W1; W2] -> (2E, F): one MXU pass in-kernel and
    # a sublane-aligned (not lane) split of the result.
    w12 = jnp.concatenate([lin_w[:, :F], lin_w[:, F:]], axis=0).astype(f32)
    # Packed small vectors -> fewer tiny DMAs.
    ba = jnp.concatenate([lin_b.reshape(-1), a.reshape(-1)]).reshape(2 * E, 1).astype(f32)
    bnvec = jnp.concatenate([gamma.reshape(-1), beta.reshape(-1)]).reshape(2 * F, 1).astype(f32)

    # Block-diagonal attention bias with off-diagonal blocks masked to -1e30 so
    # one (BK, BK) softmax reproduces the per-batch softmax exactly.
    blk_mask = jnp.kron(jnp.eye(B, dtype=f32), jnp.ones((K, K), f32)) > 0
    bigbias = jnp.where(blk_mask, jnp.tile(att_bias.astype(f32), (B, B)), -1e30)

    # Feature-major (lane-dense) input; reshape/transpose are free in XLA.
    xT = x.reshape(BK, F).T.astype(f32)

    outT = pl.pallas_call(
        functools.partial(_fused_temporal_attention_bn_kernel,
                          alpha=alpha, eps=bn_eps, E=E, F=F),
        out_shape=jax.ShapeDtypeStruct((F, BK), f32),
        grid=(1,),
        in_specs=[
            pl.BlockSpec((F, BK), lambda i: (0, 0)),        # x^T
            pl.BlockSpec((2 * E, F), lambda i: (0, 0)),     # [W1; W2]
            pl.BlockSpec((2 * E, 1), lambda i: (0, 0)),     # [bias; a]
            pl.BlockSpec((BK, BK), lambda i: (0, 0)),       # block-diag att bias
            pl.BlockSpec((2 * F, 1), lambda i: (0, 0)),     # [gamma; beta]
        ],
        out_specs=pl.BlockSpec((F, BK), lambda i: (0, 0)),
        compiler_params=pltpu.CompilerParams(dimension_semantics=("arbitrary",)),
    )(xT, w12, ba, bigbias, bnvec)

    # h.permute(0, 2, 1) in the PyTorch code is discarded (not assigned) -> no-op.
    return outT.T.reshape(B, K, F)


# ----------------------------------------------------------------------------
# Plain-JAX reference (mirrors the PyTorch forward, concat-based) for checking
# ----------------------------------------------------------------------------
def reference_forward(x, params, *, alpha=0.2, bn_eps=1e-5):
    B, K, F = x.shape
    lin_w, lin_b = params["lin_w"], params["lin_b"]
    a, att_bias = params["a"], params["att_bias"]
    gamma, beta = params["bn_gamma"], params["bn_beta"]

    rep = jnp.repeat(x, K, axis=1)                     # repeat_interleave(K, dim=1)
    alt = jnp.tile(x, (1, K, 1))                       # repeat(1, K, 1)
    comb = jnp.concatenate([rep, alt], axis=2).reshape(B, K, K, 2 * F)
    a_in = comb @ lin_w.T + lin_b
    a_in = jnp.where(a_in >= 0, a_in, alpha * a_in)    # LeakyReLU
    e = jnp.squeeze(a_in @ a, axis=3) + att_bias
    attn = jax.nn.softmax(e, axis=2)
    h = attn @ x
    h2 = h.reshape(-1, F)
    mean = jnp.mean(h2, axis=0)
    var = jnp.mean(jnp.square(h2 - mean), axis=0)
    h_bn = (h2 - mean) / jnp.sqrt(var + bn_eps) * gamma + beta
    return h_bn.reshape(B, K, F)


if __name__ == "__main__":
    # Module hyperparameters (small, consistent with the forward pass)
    batch = 2
    n_features = 8
    window_size = 16        # K
    alpha = 0.2
    # use_gatv2=True, use_bias=True, embed_dim=None -> embed_dim = 2 * n_features
    embed_dim = 2 * n_features

    key = jax.random.PRNGKey(0)
    kx, kw, kb, ka, kbias, kg, kbt = jax.random.split(key, 7)

    x = jax.random.normal(kx, (batch, window_size, n_features), dtype=jnp.float32)

    lin_in = 2 * n_features
    w_bound = 1.0 / np.sqrt(lin_in)
    a_bound = 1.414 * np.sqrt(6.0 / (embed_dim + 1))   # xavier_uniform, gain=1.414
    params = {
        "lin_w": jax.random.uniform(kw, (embed_dim, lin_in), jnp.float32, -w_bound, w_bound),
        "lin_b": jax.random.uniform(kb, (embed_dim,), jnp.float32, -w_bound, w_bound),
        "a": jax.random.uniform(ka, (embed_dim, 1), jnp.float32, -a_bound, a_bound),
        # torch init is zeros(K, K); use small deterministic values to exercise the add path
        "att_bias": 0.1 * jax.random.normal(kbias, (window_size, window_size), jnp.float32),
        "bn_gamma": 1.0 + 0.1 * jax.random.normal(kg, (n_features,), jnp.float32),
        "bn_beta": 0.1 * jax.random.normal(kbt, (n_features,), jnp.float32),
    }

    out = temporal_attention_forward(x, params, alpha=alpha)
    out = jax.block_until_ready(out)

    ref = reference_forward(x, params, alpha=alpha)
    assert out.shape == (batch, window_size, n_features)
    np.testing.assert_allclose(np.asarray(out), np.asarray(ref), rtol=1e-4, atol=1e-4)

    print("KERNEL_OK")
</pallas_src>

<mosaic_0001>
module attributes {stable_mosaic.version = 11 : i64} {
  func.func @_fused_temporal_attention_bn_kernel(%arg0: i32, %arg1: memref<8x32xf32, #tpu.memory_space<vmem>>, %arg2: memref<32x8xf32, #tpu.memory_space<vmem>>, %arg3: memref<32x1xf32, #tpu.memory_space<vmem>>, %arg4: memref<32x32xf32, #tpu.memory_space<vmem>>, %arg5: memref<16x1xf32, #tpu.memory_space<vmem>>, %arg6: memref<8x32xf32, #tpu.memory_space<vmem>>) attributes {dimension_semantics = [#tpu.dimension_semantics<arbitrary>], iteration_bounds = array<i64: 1>, scalar_prefetch = 0 : i64, scratch_operands = 0 : i64, tpu.core_type = #tpu.core_type<tc>, window_params = [{pipeline_mode = #tpu.pipeline_mode<synchronous>, transform_indices = @transform_0, window_bounds = array<i64: 8, 32>}, {pipeline_mode = #tpu.pipeline_mode<synchronous>, transform_indices = @transform_1, window_bounds = array<i64: 32, 8>}, {pipeline_mode = #tpu.pipeline_mode<synchronous>, transform_indices = @transform_2, window_bounds = array<i64: 32, 1>}, {pipeline_mode = #tpu.pipeline_mode<synchronous>, transform_indices = @transform_3, window_bounds = array<i64: 32, 32>}, {pipeline_mode = #tpu.pipeline_mode<synchronous>, transform_indices = @transform_4, window_bounds = array<i64: 16, 1>}, {pipeline_mode = #tpu.pipeline_mode<synchronous>, transform_indices = @transform_5, window_bounds = array<i64: 8, 32>}]} {
    %c0 = arith.constant 0 : index
    %c0_0 = arith.constant 0 : index
    %0 = vector.load %arg1[%c0, %c0_0] : memref<8x32xf32, #tpu.memory_space<vmem>>, vector<8x32xf32>
    %c0_1 = arith.constant 0 : index
    %c0_2 = arith.constant 0 : index
    %1 = vector.load %arg3[%c0_1, %c0_2] : memref<32x1xf32, #tpu.memory_space<vmem>>, vector<32x1xf32>
    %c0_3 = arith.constant 0 : index
    %c0_4 = arith.constant 0 : index
    %2 = vector.load %arg5[%c0_3, %c0_4] : memref<16x1xf32, #tpu.memory_space<vmem>>, vector<16x1xf32>
    %c0_5 = arith.constant 0 : index
    %c0_6 = arith.constant 0 : index
    %3 = vector.load %arg2[%c0_5, %c0_6] : memref<32x8xf32, #tpu.memory_space<vmem>>, vector<32x8xf32>
    %cst = arith.constant dense<0.000000e+00> : vector<32x32xf32>
    %4 = tpu.matmul %3, %0, %cst {dimension_numbers = #tpu.dot_dimension_numbers<[1], [0], [0], [1], [0, 0, 1, 1], [], []>} : vector<32x8xf32>, vector<8x32xf32>, vector<32x32xf32> -> vector<32x32xf32>
    %5 = vector.extract_strided_slice %4 {offsets = [0, 0], sizes = [16, 32], strides = [1, 1]} : vector<32x32xf32> to vector<16x32xf32>
    %6 = vector.extract_strided_slice %1 {offsets = [0, 0], sizes = [16, 1], strides = [1, 1]} : vector<32x1xf32> to vector<16x1xf32>
    %7 = vector.broadcast %6 : vector<16x1xf32> to vector<16x32xf32>
    %8 = arith.addf %5, %7 : vector<16x32xf32>
    %9 = vector.extract_strided_slice %4 {offsets = [16, 0], sizes = [16, 32], strides = [1, 1]} : vector<32x32xf32> to vector<16x32xf32>
    %10 = vector.extract_strided_slice %1 {offsets = [16, 0], sizes = [16, 1], strides = [1, 1]} : vector<32x1xf32> to vector<16x1xf32>
    %11 = vector.shape_cast %10 : vector<16x1xf32> to vector<16x1x1xf32>
    %12 = vector.shape_cast %8 : vector<16x32xf32> to vector<16x32x1xf32>
    %13 = vector.shape_cast %9 : vector<16x32xf32> to vector<16x1x32xf32>
    %14 = vector.broadcast %12 : vector<16x32x1xf32> to vector<16x32x32xf32>
    %15 = vector.broadcast %13 : vector<16x1x32xf32> to vector<16x32x32xf32>
    %16 = arith.addf %14, %15 : vector<16x32x32xf32>
    %cst_7 = arith.constant 0.000000e+00 : f32
    %17 = vector.broadcast %cst_7 : f32 to vector<16x32x32xf32>
    %18 = arith.cmpf oge, %16, %17 : vector<16x32x32xf32>
    %cst_8 = arith.constant 2.000000e-01 : f32
    %19 = vector.broadcast %cst_8 : f32 to vector<16x32x32xf32>
    %20 = arith.mulf %19, %16 : vector<16x32x32xf32>
    %21 = arith.select %18, %16, %20 : vector<16x32x32xi1>, vector<16x32x32xf32>
    %22 = vector.broadcast %11 : vector<16x1x1xf32> to vector<16x32x32xf32>
    %23 = arith.mulf %22, %21 : vector<16x32x32xf32>
    %cst_9 = arith.constant dense<0.000000e+00> : vector<32x32xf32>
    %24 = vector.multi_reduction <add>, %23, %cst_9 [0] : vector<16x32x32xf32> to vector<32x32xf32>
    %c0_10 = arith.constant 0 : index
    %c0_11 = arith.constant 0 : index
    %25 = vector.load %arg4[%c0_10, %c0_11] : memref<32x32xf32, #tpu.memory_space<vmem>>, vector<32x32xf32>
    %26 = arith.addf %24, %25 : vector<32x32xf32>
    %cst_12 = arith.constant dense<0xFF800000> : vector<32xf32>
    %27 = vector.multi_reduction <maximumf>, %26, %cst_12 [1] : vector<32x32xf32> to vector<32xf32>
    %28 = vector.shape_cast %27 : vector<32xf32> to vector<32x1xf32>
    %29 = vector.broadcast %28 : vector<32x1xf32> to vector<32x32xf32>
    %30 = arith.subf %26, %29 : vector<32x32xf32>
    %31 = math.exp %30 : vector<32x32xf32>
    %cst_13 = arith.constant dense<0.000000e+00> : vector<32xf32>
    %32 = vector.multi_reduction <add>, %31, %cst_13 [1] : vector<32x32xf32> to vector<32xf32>
    %33 = vector.shape_cast %32 : vector<32xf32> to vector<32x1xf32>
    %34 = vector.broadcast %33 : vector<32x1xf32> to vector<32x32xf32>
    %35 = arith.divf %31, %34 : vector<32x32xf32>
    %cst_14 = arith.constant dense<0.000000e+00> : vector<8x32xf32>
    %36 = tpu.matmul %0, %35, %cst_14 {dimension_numbers = #tpu.dot_dimension_numbers<[1], [1], [0], [0], [0, 0, 1, 0], [], []>} : vector<8x32xf32>, vector<32x32xf32>, vector<8x32xf32> -> vector<8x32xf32>
    %cst_15 = arith.constant dense<0.000000e+00> : vector<8xf32>
    %37 = vector.multi_reduction <add>, %36, %cst_15 [1] : vector<8x32xf32> to vector<8xf32>
    %38 = vector.shape_cast %37 : vector<8xf32> to vector<8x1xf32>
    %cst_16 = arith.constant 3.200000e+01 : f32
    %39 = vector.broadcast %cst_16 : f32 to vector<8x1xf32>
    %40 = arith.divf %38, %39 : vector<8x1xf32>
    %41 = vector.broadcast %40 : vector<8x1xf32> to vector<8x32xf32>
    %42 = arith.subf %36, %41 : vector<8x32xf32>
    %43 = arith.mulf %42, %42 : vector<8x32xf32>
    %cst_17 = arith.constant dense<0.000000e+00> : vector<8xf32>
    %44 = vector.multi_reduction <add>, %43, %cst_17 [1] : vector<8x32xf32> to vector<8xf32>
    %45 = vector.shape_cast %44 : vector<8xf32> to vector<8x1xf32>
    %cst_18 = arith.constant 3.200000e+01 : f32
    %46 = vector.broadcast %cst_18 : f32 to vector<8x1xf32>
    %47 = arith.divf %45, %46 : vector<8x1xf32>
    %48 = vector.extract_strided_slice %2 {offsets = [0, 0], sizes = [8, 1], strides = [1, 1]} : vector<16x1xf32> to vector<8x1xf32>
    %49 = vector.extract_strided_slice %2 {offsets = [8, 0], sizes = [8, 1], strides = [1, 1]} : vector<16x1xf32> to vector<8x1xf32>
    %50 = vector.broadcast %40 : vector<8x1xf32> to vector<8x32xf32>
    %51 = arith.subf %36, %50 : vector<8x32xf32>
    %cst_19 = arith.constant 9.99999974E-6 : f32
    %52 = vector.broadcast %cst_19 : f32 to vector<8x1xf32>
    %53 = arith.addf %47, %52 : vector<8x1xf32>
    %54 = math.rsqrt %53 : vector<8x1xf32>
    %55 = vector.broadcast %54 : vector<8x1xf32> to vector<8x32xf32>
    %56 = arith.mulf %51, %55 : vector<8x32xf32>
    %57 = vector.broadcast %48 : vector<8x1xf32> to vector<8x32xf32>
    %58 = arith.mulf %56, %57 : vector<8x32xf32>
    %59 = vector.broadcast %49 : vector<8x1xf32> to vector<8x32xf32>
    %60 = arith.addf %58, %59 : vector<8x32xf32>
    %c0_20 = arith.constant 0 : index
    %c0_21 = arith.constant 0 : index
    %61 = vector.load %arg6[%c0_20, %c0_21] : memref<8x32xf32, #tpu.memory_space<vmem>>, vector<8x32xf32>
    tpu.vector_store %arg6[%c0_20, %c0_21], %60 {strides = array<i32>} : memref<8x32xf32, #tpu.memory_space<vmem>>, vector<8x32xf32>,
    return
  }
  func.func @transform_0(%arg0: i32) -> (i32, i32) {
    %c0_i32 = arith.constant 0 : i32
    %c0_i32_0 = arith.constant 0 : i32
    %c0_i32_1 = arith.constant 0 : i32
    return %c0_i32, %c0_i32_0 : i32, i32
  }
  func.func @transform_1(%arg0: i32) -> (i32, i32) {
    %c0_i32 = arith.constant 0 : i32
    %c0_i32_0 = arith.constant 0 : i32
    %c0_i32_1 = arith.constant 0 : i32
    return %c0_i32, %c0_i32_0 : i32, i32
  }
  func.func @transform_2(%arg0: i32) -> (i32, i32) {
    %c0_i32 = arith.constant 0 : i32
    %c0_i32_0 = arith.constant 0 : i32
    %c0_i32_1 = arith.constant 0 : i32
    return %c0_i32, %c0_i32_0 : i32, i32
  }
  func.func @transform_3(%arg0: i32) -> (i32, i32) {
    %c0_i32 = arith.constant 0 : i32
    %c0_i32_0 = arith.constant 0 : i32
    %c0_i32_1 = arith.constant 0 : i32
    return %c0_i32, %c0_i32_0 : i32, i32
  }
  func.func @transform_4(%arg0: i32) -> (i32, i32) {
    %c0_i32 = arith.constant 0 : i32
    %c0_i32_0 = arith.constant 0 : i32
    %c0_i32_1 = arith.constant 0 : i32
    return %c0_i32, %c0_i32_0 : i32, i32
  }
  func.func @transform_5(%arg0: i32) -> (i32, i32) {
    %c0_i32 = arith.constant 0 : i32
    %c0_i32_0 = arith.constant 0 : i32
    %c0_i32_1 = arith.constant 0 : i32
    return %c0_i32, %c0_i32_0 : i32, i32
  }
}

</mosaic_0001>

<bundles_post_ra>
// kernel: tpu_custom_call.1
= control target key start
LH: loop header
LB: loop body
LE: loop exit
PB: predicated region body
PF: predicated region fallthrough
CT: control target
= control target key end

     0   :  { %vm32_vm0 = vcmask 64512   ;;  %v1394_v3 = vmov 0   ;;  %s2046_s0 = inlined_call_operand.vmem [shape: f32[8,32], index: 0, kind: input, shape index: {}]   ;;  %s2047_s1 = inlined_call_operand.vmem [shape: f32[32,8], index: 1, kind: input, shape index: {}]   ;;  %s2048_s2 = inlined_call_operand.vmem [shape: f32[32,1], index: 2, kind: input, shape index: {}]   ;;  %s2049_s3 = inlined_call_operand.vmem [shape: f32[32,32], index: 3, kind: input, shape index: {}]   ;;  %s2050_s4 = inlined_call_operand.vmem [shape: f32[16,1], index: 4, kind: input, shape index: {}]   ;;  %s2051_s5 = inlined_call_operand.hbm [shape: f32[8,32], index: 5, kind: output, shape index: {}]  }
   0x1   :  { %v21_v0 = vld [vmem:[%s2046_s0] sm:$0xff]  ;;  %1285 = vset.pattern.permute.xlu0 %v1394_v3  ;;  %v24_v4 = vld [vmem:[%s2048_s2 + $0x10] sm:$0xff] }
   0x2   :  { %v28_v1 = vld [vmem:[%s2047_s1] sm:$0xff]  ;;  %60 = vmatpush.msra.mxu0 %v21_v0  ;;  %v806_v5 = vperm.slane %v24_v4, 0 }
   0x3   :  { %v22_v2 = vld [vmem:[%s2048_s2] sm:$0xff]  ;;  %1272 = vmatmul.msk.f32.vlgmr.msra.gmra.mxu0 %vm32_vm0, %v28_v1 }
   0x4   :  { %76 = vperm.xlu0 %1285, %v22_v2  }
   0x5   :  { %10 = vsyncpa [#allocation3], 0  ;;  %1286 = vset.pattern.permute.xlu1 %v1394_v3  ;;  %1281 = vmatpush.msra.mxu2 %v21_v0  ;;  %v89_v6 = vrot.slane %v24_v4, 2  ;;  %v29_v7 = vld [vmem:[%s2047_s1 + $0x8] sm:$0xff]  ;;  %v90_v10 = vrot.slane %v24_v4, 3  ;;  %v30_v11 = vld [vmem:[%s2047_s1 + $0x10] sm:$0xff]  ;;  %v103_v23 = vlaneseq }
   0x6   :  { %823 = vperm.xlu1 %1286, %v806_v5   ;;  %1287 = vset.pattern.permute.xlu2 %v1394_v3  ;;  %v23_v8 = vld [vmem:[%s2048_s2 + $0x8] sm:$0xff]  ;;  %v88_v12 = vrot.slane %v24_v4, 1  ;;  %v93_v15 = vrot.slane %v24_v4, 6  ;;  %v91_v16 = vrot.slane %v24_v4, 4  ;;  %v92_v19 = vrot.slane %v24_v4, 5  ;;  %v31_v35 = vld [vmem:[%s2047_s1 + $0x18] sm:$0xff] }
   0x7   :  { %v808_v9 = vperm.slane %v89_v6, 0  ;;  %1274 = vmatmul.msk.f32.vlgmr.msra.gmra.mxu2 %vm32_vm0, %v30_v11  ;;  %v809_v14 = vperm.slane %v90_v10, 0  ;;  %v94_v21 = vrot.slane %v24_v4, 7  ;;  %v1454_v24 = vshrl.u32 %v103_v23, 7  ;;  %v1557_v0 = vld [vmem:[%s2048_s2 + $0x18] sm:$0xff]  ;;  %s1263_s24 = sshll.u32 %s2051_s5, 4  ;;  %s1264_s24 = int_to_ptr.hbm [resolvable:$true] %s1263_s24 }
   0x8   :  { %v807_v13 = vperm.slane %v88_v12, 0  ;;  %v812_v17 = vperm.slane %v93_v15, 0  ;;  %v810_v18 = vperm.slane %v91_v16, 0  ;;  %v811_v20 = vperm.slane %v92_v19, 0 }
   0x9   :  { %v813_v22 = vperm.slane %v94_v21, 0  ;;  %v1458_v25 = vadd.s32 16, %v1454_v24  ;;  %v1461_v26 = vadd.s32 8, %v1454_v24  ;;  %v1466_v32 = vadd.s32 24, %v1454_v24 }
   0xa   :  { %827 = vperm.xlu2 %1287, %v807_v13   ;;  %v814_v6 = vperm.slane %v1557_v0, 0  ;;  %vm950_vm3 = vcmask 261120   ;;  %v95_v11 = vrot.slane %v1557_v0, 1  ;;  %v100_v23 = vrot.slane %v1557_v0, 6 }
   0xb   :  { %1273 = vmatmul.msk.f32.gmra.mxu0 %vm32_vm0, %v29_v7 }
   0xc   :  { %81 = vperm.xlu0 %1285, %v23_v8   ;;  %v815_v19 = vperm.slane %v95_v11, 0 }
   0xe   :  { %831 = vperm.xlu1 %1286, %v808_v9  }
   0xf   :  { %1275 = vmatmul.msk.f32.gmra.mxu2 %vm32_vm0, %v31_v35 }
  0x12   :  { %847 = vperm.xlu2 %1287, %v812_v17  }
  0x14   :  { %1295 = vset.pattern.permute.xlu0 %v1461_v26 }
  0x16   :  { %835 = vperm.xlu1 %1286, %v809_v14  }
  0x1a   :  { %1290 = vset.pattern.permute.xlu2 %v1458_v25 }
  0x1e   :  { %839 = vperm.xlu1 %1286, %v810_v18  }
  0x26   :  { %843 = vperm.xlu1 %1286, %v811_v20  }
  0x2e   :  { %851 = vperm.xlu1 %1286, %v813_v22  }
  0x36   :  { %1288 = vset.pattern.permute.xlu1 %v1454_v24 }
  0x64   :  { %v1513_v46 = vpop.permute.xlu2 %827 }
  0x6c   :  { %v1525_v49 = vpop.permute.xlu2 %847 }
  0x76   :  { %v77_v27 = vpop.permute.xlu0 %76 }
  0x78   :  { %v1497_v39 = vpop.permute.xlu1 %823 }
  0x7e   :  { %v82_v41 = vpop.permute.xlu0 %81 }
  0x80   :  { %v62_v28 = vpop.f32.mrf.mxu0  ;;  %v1504_v43 = vpop.permute.xlu1 %831 }
  0x81   :  { %v84_v29 = vadd.f32 %v77_v27, %v62_v28 }
  0x83   :  { %v152_v30 = vperm.slane %v84_v29, 2  ;;  %v102_v31 = vperm.slane %v84_v29, 0  ;;  %v177_v33 = vperm.slane %v84_v29, 3  ;;  %v1471_v34 = vperm.slane %v84_v29, 1 }
  0x84   :  { %v1480_v36 = vperm.slane %v84_v29, 4  ;;  %v1485_v37 = vperm.slane %v84_v29, 6  ;;  %v1490_v38 = vperm.slane %v84_v29, 7  ;;  %v227_v51 = vperm.slane %v84_v29, 5 }
  0x85   :  { %163 = vperm.xlu0 %1295, %v152_v30   ;;  %119 = vperm.xlu2 %1290, %v102_v31  }
  0x86   :  { %107 = vperm.xlu1 %1288, %v102_v31  }
  0x88   :  { %v65_v40 = vpop.f32.mrf.mxu0  ;;  %v1511_v45 = vpop.permute.xlu1 %835 }
  0x89   :  { %v1502_v42 = vadd.f32 %v82_v41, %v65_v40 }
  0x8a   :  { %v1534_v54 = vpop.f32.mrf.mxu2 }
  0x8b   :  { %v1507_v44 = vperm.slane %v1502_v42, 1  ;;  %v1518_v47 = vperm.slane %v1502_v42, 2  ;;  %v1528_v50 = vperm.slane %v1502_v42, 3  ;;  %v1537_v55 = vperm.slane %v1534_v54, 0 }
  0x8c   :  { %v504_v59 = vrot.slane %v1534_v54, 1  ;;  %v1548_v60 = vperm.slane %v1502_v42, 7  ;;  %v505_v8 = vrot.slane %v1534_v54, 2  ;;  %v1579_v21 = vperm.slane %v1502_v42, 0 }
  0x8d   :  { %1300 = vset.pattern.permute.xlu0 %v1458_v25  ;;  %1291 = vset.pattern.permute.xlu2 %v1466_v32 }
  0x8e   :  { %1289 = vset.pattern.permute.xlu1 %v1461_v26  ;;  %v1550_v62 = vperm.slane %v504_v59, 0  ;;  %v1571_v13 = vperm.slane %v505_v8, 0 }
  0x90   :  { %v1520_v48 = vpop.permute.xlu1 %839 }
  0x95   :  { %194 = vperm.xlu0 %1300, %v177_v33   ;;  %125 = vperm.xlu2 %1291, %v102_v31  }
  0x96   :  { %113 = vperm.xlu1 %1289, %v102_v31   ;;  %v820_v31 = vperm.slane %v100_v23, 0 }
  0x98   :  { %v1532_v52 = vpop.permute.xlu1 %843 }
  0x9d   :  { %1303 = vset.pattern.permute.xlu0 %v1466_v32  ;;  %1292 = vset.pattern.permute.xlu2 %v1458_v25 }
  0x9e   :  { %138 = vperm.xlu1 %1289, %v1471_v34  }
  0xa0   :  { %v1543_v57 = vpop.permute.xlu1 %851 }
  0xa5   :  { %225 = vperm.xlu0 %1303, %v1480_v36   ;;  %144 = vperm.xlu2 %1292, %v1471_v34  }
  0xa6   :  { %1293 = vset.pattern.permute.xlu1 %v1466_v32 }
  0xad   :  { %275 = vperm.xlu0 %1303, %v1485_v37   ;;  %1294 = vset.pattern.permute.xlu2 %v1454_v24 }
  0xae   :  { %150 = vperm.xlu1 %1293, %v1471_v34  }
  0xb5   :  { %300 = vperm.xlu0 %1303, %v1490_v38   ;;  %157 = vperm.xlu2 %1294, %v152_v30  }
  0xb6   :  { %1296 = vset.pattern.permute.xlu1 %v1458_v25 }
  0xbd   :  { %1307 = vset.pattern.permute.xlu0 %v1458_v25  ;;  %1297 = vset.pattern.permute.xlu2 %v1466_v32 }
  0xbe   :  { %169 = vperm.xlu1 %1296, %v152_v30  }
  0xc5   :  { %269 = vperm.xlu0 %1307, %v1485_v37   ;;  %175 = vperm.xlu2 %1297, %v152_v30  }
  0xc6   :  { %1298 = vset.pattern.permute.xlu1 %v1454_v24 }
  0xcd   :  { %1313 = vset.pattern.permute.xlu0 %v1466_v32  ;;  %1299 = vset.pattern.permute.xlu2 %v1461_v26 }
  0xce   :  { %182 = vperm.xlu1 %1298, %v177_v33  }
  0xd5   :  { %188 = vperm.xlu2 %1299, %v177_v33   ;;  %350 = vperm.xlu0 %1313, %v1507_v44  }
  0xd6   :  { %1301 = vset.pattern.permute.xlu1 %v1466_v32 }
  0xdd   :  { %1302 = vset.pattern.permute.xlu2 %v1454_v24  ;;  %1318 = vset.pattern.permute.xlu0 %v1458_v25 }
  0xde   :  { %200 = vperm.xlu1 %1301, %v177_v33  }
  0xdf   :  { %v120_v53 = vpop.permute.xlu2 %119 }
  0xe0   :  { %v552_v58 = vadd.f32 %v1537_v55, %v120_v53 }
  0xe2   :  { %v680_v61 = vmul.f32 0.2, %v552_v58  ;;  %vm616_vm1 = vcmp.ge.f32.partialorder %v552_v58, 0.0 }
  0xe4   :  { %v744_v1 = vsel %vm616_vm1, %v552_v58, %v680_v61 }
  0xe5   :  { %207 = vperm.xlu2 %1302, %v1480_v36   ;;  %369 = vperm.xlu0 %1318, %v1518_v47   ;;  %v888_v7 = vmul.f32 %v1497_v39, %v744_v1 }
  0xe6   :  { %1308 = vset.pattern.permute.xlu1 %v1461_v26 }
  0xe7   :  { %v1013_v12 = vsel %vm950_vm3, %v888_v7, 0.0 }
  0xed   :  { %1304 = vset.pattern.permute.xlu2 %v1466_v32  ;;  %394 = vperm.xlu0 %1318, %v1528_v50  }
  0xee   :  { %238 = vperm.xlu1 %1308, %v227_v51  }
  0xef   :  { %v1541_v56 = vpop.permute.xlu2 %125 }
  0xf5   :  { %250 = vperm.xlu2 %1304, %v227_v51   ;;  %1331 = vset.pattern.permute.xlu0 %v1466_v32 }
  0xf6   :  { %1311 = vset.pattern.permute.xlu1 %v1454_v24 }
  0xf7   :  { %v164_v15 = vpop.permute.xlu0 %163 }
  0xf8   :  { %v1559_v2 = vpop.permute.xlu1 %107  ;;  %v559_v20 = vadd.f32 %v1571_v13, %v164_v15 }
  0xfa   :  { %v687_v27 = vmul.f32 0.2, %v559_v20  ;;  %vm623_vm5 = vcmp.ge.f32.partialorder %v559_v20, 0.0 }
  0xfc   :  { %v751_v33 = vsel %vm623_vm5, %v559_v20, %v687_v27 }
  0xfd   :  { %1305 = vset.pattern.permute.xlu2 %v1458_v25  ;;  %500 = vperm.xlu0 %1331, %v1548_v60  }
  0xfe   :  { %232 = vperm.xlu1 %1311, %v227_v51  }
  0xff   :  { %v145_v63 = vpop.permute.xlu2 %144 }
 0x100   :  { %v556_v4 = vadd.f32 %v1550_v62, %v145_v63  ;;  %v553_v63 = vadd.f32 %v1537_v55, %v1541_v56 }
 0x102   :  { %vm620_vm2 = vcmp.ge.f32.partialorder %v556_v4, 0.0  ;;  %v684_v5 = vmul.f32 0.2, %v556_v4  ;;  %vm617_vm7 = vcmp.ge.f32.partialorder %v553_v63, 0.0 }
 0x104   :  { %v748_v9 = vsel %vm620_vm2, %v556_v4, %v684_v5 }
 0x105   :  { %v892_v10 = vmul.f32 %v1513_v46, %v748_v9  ;;  %219 = vperm.xlu2 %1305, %v1480_v36   ;;  %1332 = vset.pattern.permute.xlu0 %v1394_v3 }
 0x106   :  { %1312 = vset.pattern.permute.xlu1 %v1466_v32  ;;  %855 = vperm.xlu0 %1332, %v814_v6   ;;  %v681_v6 = vmul.f32 0.2, %v553_v63 }
 0x107   :  { %v1014_v14 = vsel %vm950_vm3, %v892_v10, 0.0  ;;  %v195_v23 = vpop.permute.xlu0 %194 }
 0x108   :  { %v1574_v16 = vadd.f32 %v1014_v14, %v1013_v12  ;;  %v114_v17 = vpop.permute.xlu1 %113  ;;  %v745_v10 = vsel %vm617_vm7, %v553_v63, %v681_v6  ;;  %v506_v12 = vrot.slane %v1534_v54, 3 }
 0x109   :  { %v551_v18 = vadd.f32 %v1537_v55, %v114_v17 }
 0x10a   :  { %v1608_v20 = vperm.slane %v506_v12, 0 }
 0x10b   :  { %v679_v22 = vmul.f32 0.2, %v551_v18  ;;  %vm615_vm4 = vcmp.ge.f32.partialorder %v551_v18, 0.0 }
 0x10d   :  { %244 = vperm.xlu2 %1305, %v227_v51   ;;  %v743_v29 = vsel %vm615_vm4, %v551_v18, %v679_v22  ;;  %v895_v51 = vmul.f32 %v1504_v43, %v751_v33 }
 0x10e   :  { %325 = vperm.xlu1 %1312, %v1579_v21   ;;  %859 = vperm.xlu0 %1332, %v815_v19   ;;  %v887_v40 = vmul.f32 %v1497_v39, %v743_v29 }
 0x10f   :  { %v1589_v58 = vpop.permute.xlu2 %157  ;;  %v985_v4 = vsel %vm950_vm3, %v895_v51, 0.0 }
 0x110   :  { %v139_v28 = vpop.permute.xlu1 %138  ;;  %v982_v59 = vsel %vm950_vm3, %v887_v40, 0.0 }
 0x111   :  { %v555_v30 = vadd.f32 %v1550_v62, %v139_v28 }
 0x113   :  { %vm619_vm6 = vcmp.ge.f32.partialorder %v555_v30, 0.0  ;;  %v683_v35 = vmul.f32 0.2, %v555_v30 }
 0x115   :  { %v747_v41 = vsel %vm619_vm6, %v555_v30, %v683_v35  ;;  %1306 = vset.pattern.permute.xlu2 %v1461_v26  ;;  %v564_v30 = vadd.f32 %v1608_v20, %v195_v23 }
 0x116   :  { %v891_v53 = vmul.f32 %v1513_v46, %v747_v41  ;;  %1314 = vset.pattern.permute.xlu1 %v1458_v25  ;;  %879 = vperm.xlu0 %1332, %v820_v31  }
 0x117   :  { %vm628_vm10 = vcmp.ge.f32.partialorder %v564_v30, 0.0 }
 0x118   :  { %v983_v61 = vsel %vm950_vm3, %v891_v53, 0.0 }
 0x119   :  { %v984_v1 = vadd.f32 %v983_v61, %v982_v59  ;;  %v226_v61 = vpop.permute.xlu0 %225 }
 0x11b   :  { %v986_v5 = vadd.f32 %v985_v4, %v984_v1 }
 0x11d   :  { %213 = vperm.xlu2 %1306, %v1480_v36   ;;  %v889_v36 = vmul.f32 %v1497_v39, %v745_v10 }
 0x11e   :  { %319 = vperm.xlu1 %1314, %v1579_v21   ;;  %1337 = vset.pattern.permute.xlu0 %v1454_v24 }
 0x11f   :  { %v176_v7 = vpop.permute.xlu2 %175  ;;  %v1044_v22 = vsel %vm950_vm3, %v889_v36, 0.0 }
 0x120   :  { %v561_v8 = vadd.f32 %v1571_v13, %v176_v7  ;;  %v151_v9 = vpop.permute.xlu1 %150 }
 0x121   :  { %v557_v11 = vadd.f32 %v1550_v62, %v151_v9  ;;  %v1637_v36 = vpop.permute.xlu0 %275 }
 0x122   :  { %vm625_vm8 = vcmp.ge.f32.partialorder %v561_v8, 0.0  ;;  %v689_v56 = vmul.f32 0.2, %v561_v8 }
 0x123   :  { %vm621_vm9 = vcmp.ge.f32.partialorder %v557_v11, 0.0  ;;  %v685_v14 = vmul.f32 0.2, %v557_v11 }
 0x124   :  { %v753_v15 = vsel %vm625_vm8, %v561_v8, %v689_v56 }
 0x125   :  { %v749_v17 = vsel %vm621_vm9, %v557_v11, %v685_v14  ;;  %1309 = vset.pattern.permute.xlu2 %v1458_v25  ;;  %v897_v18 = vmul.f32 %v1504_v43, %v753_v15  ;;  %v1634_v14 = vperm.slane %v1502_v42, 4 }
 0x126   :  { %v893_v19 = vmul.f32 %v1513_v46, %v749_v17  ;;  %344 = vperm.xlu1 %1314, %v1507_v44   ;;  %132 = vperm.xlu0 %1337, %v1471_v34   ;;  %v692_v34 = vmul.f32 0.2, %v564_v30 }
 0x127   :  { %v1047_v29 = vsel %vm950_vm3, %v897_v18, 0.0  ;;  %v508_v18 = vrot.slane %v1534_v54, 5 }
 0x128   :  { %v1045_v27 = vsel %vm950_vm3, %v893_v19, 0.0  ;;  %v756_v53 = vsel %vm628_vm10, %v564_v30, %v692_v34 }
 0x129   :  { %v1046_v28 = vadd.f32 %v1045_v27, %v1044_v22  ;;  %v900_v6 = vmul.f32 %v1511_v45, %v756_v53  ;;  %v1649_v17 = vpop.permute.xlu0 %300  ;;  %v1655_v22 = vperm.slane %v508_v18, 0 }
 0x12b   :  { %v1614_v31 = vadd.f32 %v1047_v29, %v1046_v28  ;;  %v1018_v56 = vsel %vm950_vm3, %v900_v6, 0.0 }
 0x12d   :  { %294 = vperm.xlu2 %1309, %v1490_v38  }
 0x12e   :  { %1316 = vset.pattern.permute.xlu1 %v1454_v24  ;;  %307 = vperm.xlu0 %1337, %v1579_v21  }
 0x12f   :  { %v189_v33 = vpop.permute.xlu2 %188 }
 0x130   :  { %v563_v35 = vadd.f32 %v1608_v20, %v189_v33  ;;  %v170_v40 = vpop.permute.xlu1 %169 }
 0x131   :  { %v560_v41 = vadd.f32 %v1571_v13, %v170_v40 }
 0x132   :  { %vm627_vm11 = vcmp.ge.f32.partialorder %v563_v35, 0.0  ;;  %v691_v51 = vmul.f32 0.2, %v563_v35 }
 0x133   :  { %vm624_vm12 = vcmp.ge.f32.partialorder %v560_v41, 0.0  ;;  %v688_v59 = vmul.f32 0.2, %v560_v41 }
 0x134   :  { %v755_v63 = vsel %vm627_vm11, %v563_v35, %v691_v51 }
 0x135   :  { %v899_v1 = vmul.f32 %v1511_v45, %v755_v63  ;;  %v752_v4 = vsel %vm624_vm12, %v560_v41, %v688_v59  ;;  %1310 = vset.pattern.permute.xlu2 %v1461_v26 }
 0x136   :  { %v896_v7 = vmul.f32 %v1504_v43, %v752_v4  ;;  %257 = vperm.xlu1 %1316, %v1485_v37   ;;  %332 = vperm.xlu0 %1337, %v1507_v44  }
 0x137   :  { %v987_v8 = vsel %vm950_vm3, %v899_v1, 0.0  ;;  %v1660_v28 = vpop.permute.xlu0 %269 }
 0x138   :  { %v1628_v9 = vadd.f32 %v987_v8, %v986_v5  ;;  %v1016_v10 = vsel %vm950_vm3, %v896_v7, 0.0  ;;  %v507_v5 = vrot.slane %v1534_v54, 4 }
 0x139   :  { %v1017_v11 = vadd.f32 %v1016_v10, %v1574_v16 }
 0x13a   :  { %v1645_v16 = vperm.slane %v507_v5, 0 }
 0x13b   :  { %v1019_v12 = vadd.f32 %v1018_v56, %v1017_v11 }
 0x13c   :  { %v569_v19 = vadd.f32 %v1645_v16, %v226_v61 }
 0x13d   :  { %263 = vperm.xlu2 %1310, %v1485_v37  }
 0x13e   :  { %1319 = vset.pattern.permute.xlu1 %v1466_v32  ;;  %407 = vperm.xlu0 %1337, %v1634_v14   ;;  %v697_v23 = vmul.f32 0.2, %v569_v19  ;;  %vm633_vm13 = vcmp.ge.f32.partialorder %v569_v19, 0.0 }
 0x13f   :  { %v1647_v15 = vpop.permute.xlu2 %207 }
 0x140   :  { %v1651_v37 = vpop.permute.xlu1 %182  ;;  %v761_v35 = vsel %vm633_vm13, %v569_v19, %v697_v23 }
 0x141   :  { %v905_v53 = vmul.f32 %v1520_v48, %v761_v35  ;;  %v509_v35 = vrot.slane %v1534_v54, 6 }
 0x143   :  { %v1051_v6 = vsel %vm950_vm3, %v905_v53, 0.0  ;;  %v1697_v53 = vperm.slane %v509_v35, 0 }
 0x145   :  { %288 = vperm.xlu2 %1310, %v1490_v38  }
 0x146   :  { %425 = vperm.xlu1 %1319, %v1634_v14   ;;  %482 = vperm.xlu0 %1337, %v1548_v60  }
 0x147   :  { %v1668_v61 = vpop.permute.xlu0 %350 }
 0x14d   :  { %1315 = vset.pattern.permute.xlu2 %v1466_v32 }
 0x14e   :  { %1321 = vset.pattern.permute.xlu1 %v1454_v24  ;;  %1346 = vset.pattern.permute.xlu0 %v1394_v3 }
 0x14f   :  { %v251_v27 = vpop.permute.xlu2 %250 }
 0x150   :  { %v573_v29 = vadd.f32 %v1655_v22, %v251_v27  ;;  %v201_v30 = vpop.permute.xlu1 %200 }
 0x151   :  { %v565_v34 = vadd.f32 %v1608_v20, %v201_v30 }
 0x152   :  { %vm637_vm14 = vcmp.ge.f32.partialorder %v573_v29, 0.0  ;;  %v701_v33 = vmul.f32 0.2, %v573_v29 }
 0x153   :  { %vm629_vm15 = vcmp.ge.f32.partialorder %v565_v34, 0.0  ;;  %v693_v40 = vmul.f32 0.2, %v565_v34 }
 0x154   :  { %v765_v41 = vsel %vm637_vm14, %v573_v29, %v701_v33 }
 0x155   :  { %v757_v51 = vsel %vm629_vm15, %v565_v34, %v693_v40  ;;  %375 = vperm.xlu2 %1315, %v1518_v47   ;;  %v909_v63 = vmul.f32 %v1532_v52, %v765_v41 }
 0x156   :  { %v901_v59 = vmul.f32 %v1511_v45, %v757_v51  ;;  %282 = vperm.xlu1 %1321, %v1490_v38   ;;  %v96_v51 = vrot.slane %v1557_v0, 2 }
 0x157   :  { %v1053_v8 = vsel %vm950_vm3, %v909_v63, 0.0  ;;  %v1679_v11 = vpop.permute.xlu0 %369 }
 0x158   :  { %v1049_v1 = vsel %vm950_vm3, %v901_v59, 0.0 }
 0x159   :  { %v1050_v4 = vadd.f32 %v1049_v1, %v1614_v31  ;;  %v1683_v31 = vperm.slane %v1502_v42, 5 }
 0x15b   :  { %v1052_v7 = vadd.f32 %v1051_v6, %v1050_v4 }
 0x15d   :  { %v1675_v10 = vadd.f32 %v1053_v8, %v1052_v7  ;;  %400 = vperm.xlu2 %1315, %v1528_v50   ;;  %v816_v7 = vperm.slane %v96_v51, 0 }
 0x15e   :  { %1323 = vset.pattern.permute.xlu1 %v1466_v32 }
 0x15f   :  { %v220_v38 = vpop.permute.xlu2 %219  ;;  %v1690_v34 = vpop.permute.xlu0 %394 }
 0x160   :  { %v568_v56 = vadd.f32 %v1645_v16, %v220_v38  ;;  %v239_v59 = vpop.permute.xlu1 %238 }
 0x161   :  { %v571_v4 = vadd.f32 %v1655_v22, %v239_v59 }
 0x162   :  { %vm632_vm0 = vcmp.ge.f32.partialorder %v568_v56, 0.0  ;;  %v696_v5 = vmul.f32 0.2, %v568_v56 }
 0x163   :  { %v699_v38 = vmul.f32 0.2, %v571_v4  ;;  %vm635_vm2 = vcmp.ge.f32.partialorder %v571_v4, 0.0 }
 0x164   :  { %v760_v18 = vsel %vm632_vm0, %v568_v56, %v696_v5 }
 0x165   :  { %v904_v19 = vmul.f32 %v1520_v48, %v760_v18  ;;  %1317 = vset.pattern.permute.xlu2 %v1461_v26 }
 0x166   :  { %450 = vperm.xlu1 %1323, %v1683_v31  }
 0x167   :  { %v1020_v23 = vsel %vm950_vm3, %v904_v19, 0.0  ;;  %v245_v27 = vpop.permute.xlu2 %244 }
 0x168   :  { %v1021_v29 = vadd.f32 %v1020_v23, %v1019_v12  ;;  %v572_v30 = vadd.f32 %v1655_v22, %v245_v27  ;;  %v510_v12 = vrot.slane %v1534_v54, 7 }
 0x16a   :  { %vm636_vm1 = vcmp.ge.f32.partialorder %v572_v30, 0.0  ;;  %v700_v33 = vmul.f32 0.2, %v572_v30  ;;  %v1708_v8 = vperm.slane %v510_v12, 0  ;;  %v576_v12 = vadd.f32 %v1697_v53, %v1660_v28 }
 0x16c   :  { %v764_v40 = vsel %vm636_vm1, %v572_v30, %v700_v33  ;;  %v581_v56 = vadd.f32 %v1708_v8, %v1649_v17  ;;  %v1717_v30 = vpop.f32.mrf.mxu2  ;;  %vm640_vm7 = vcmp.ge.f32.partialorder %v576_v12, 0.0 }
 0x16d   :  { %v908_v41 = vmul.f32 %v1532_v52, %v764_v40  ;;  %313 = vperm.xlu2 %1317, %v1579_v21   ;;  %v577_v21 = vadd.f32 %v1697_v53, %v1637_v36  ;;  %v763_v36 = vsel %vm635_vm2, %v571_v4, %v699_v38 }
 0x16e   :  { %1325 = vset.pattern.permute.xlu1 %v1461_v26  ;;  %vm645_vm6 = vcmp.ge.f32.partialorder %v581_v56, 0.0  ;;  %v907_v17 = vmul.f32 %v1532_v52, %v763_v36  ;;  %v1741_v36 = vperm.slane %v1502_v42, 6 }
 0x16f   :  { %v1022_v63 = vsel %vm950_vm3, %v908_v41, 0.0  ;;  %v1704_v6 = vpop.permute.xlu0 %500  ;;  %v705_v54 = vmul.f32 0.2, %v577_v21  ;;  %vm641_vm4 = vcmp.ge.f32.partialorder %v577_v21, 0.0  ;;  %v1724_v41 = vperm.slane %v1717_v30, 0 }
 0x170   :  { %v1701_v1 = vadd.f32 %v1022_v63, %v1021_v29  ;;  %v1714_v18 = vpop.permute.xlu1 %232  ;;  %v709_v29 = vmul.f32 0.2, %v581_v56 }
 0x171   :  { %v769_v27 = vsel %vm641_vm4, %v577_v21, %v705_v54  ;;  %v991_v21 = vsel %vm950_vm3, %v907_v17, 0.0 }
 0x172   :  { %v913_v51 = vmul.f32 %v1525_v49, %v769_v27  ;;  %v773_v59 = vsel %vm645_vm6, %v581_v56, %v709_v29 }
 0x174   :  { %v1055_v54 = vsel %vm950_vm3, %v913_v51, 0.0 }
 0x175   :  { %1320 = vset.pattern.permute.xlu2 %v1394_v3 }
 0x176   :  { %363 = vperm.xlu1 %1325, %v1518_v47   ;;  %863 = vperm.xlu2 %1320, %v816_v7  }
 0x177   :  { %v214_v5 = vpop.permute.xlu2 %213 }
 0x178   :  { %v567_v19 = vadd.f32 %v1645_v16, %v214_v5  ;;  %v1719_v35 = vpop.permute.xlu0 %855  ;;  %v917_v5 = vmul.f32 %v1543_v57, %v773_v59 }
 0x17a   :  { %vm631_vm5 = vcmp.ge.f32.partialorder %v567_v19, 0.0  ;;  %v695_v23 = vmul.f32 0.2, %v567_v19 }
 0x17c   :  { %v759_v33 = vsel %vm631_vm5, %v567_v19, %v695_v23  ;;  %v704_v19 = vmul.f32 0.2, %v576_v12  ;;  %v1057_v23 = vsel %vm950_vm3, %v917_v5, 0.0 }
 0x17d   :  { %v903_v40 = vmul.f32 %v1520_v48, %v759_v33 }
 0x17e   :  { %1327 = vset.pattern.permute.xlu1 %v1466_v32  ;;  %1322 = vset.pattern.permute.xlu2 %v1461_v26  ;;  %v1056_v32 = vadd.f32 %v1055_v54, %v1675_v10  ;;  %v768_v27 = vsel %vm640_vm7, %v576_v12, %v704_v19  ;;  %v97_v10 = vrot.slane %v1557_v0, 3  ;;  %v558_v19 = vadd.f32 %v1571_v13, %v1589_v58 }
 0x17f   :  { %v989_v63 = vsel %vm950_vm3, %v903_v40, 0.0  ;;  %v912_v59 = vmul.f32 %v1525_v49, %v768_v27  ;;  %v566_v58 = vadd.f32 %v1645_v16, %v1647_v15 }
 0x180   :  { %v990_v4 = vadd.f32 %v989_v63, %v1628_v9  ;;  %v326_v7 = vpop.permute.xlu1 %325  ;;  %v1745_v33 = vpop.permute.xlu0 %859  ;;  %v1058_v17 = vadd.f32 %v1057_v23, %v1056_v32  ;;  %v686_v23 = vmul.f32 0.2, %v558_v19  ;;  %vm622_vm12 = vcmp.ge.f32.partialorder %v558_v19, 0.0 }
 0x181   :  { %v585_v38 = vadd.f32 %v1724_v41, %v326_v7  ;;  %v550_v7 = vadd.f32 %v1537_v55, %v1559_v2  ;;  %vm630_vm1 = vcmp.ge.f32.partialorder %v566_v58, 0.0 }
 0x182   :  { %v1737_v28 = vadd.f32 %v991_v21, %v990_v4  ;;  %v817_v4 = vperm.slane %v97_v10, 0  ;;  %v99_v10 = vrot.slane %v1557_v0, 5 }
 0x183   :  { %vm649_vm8 = vcmp.ge.f32.partialorder %v585_v38, 0.0  ;;  %v713_v56 = vmul.f32 0.2, %v585_v38  ;;  %v678_v55 = vmul.f32 0.2, %v550_v7  ;;  %vm614_vm10 = vcmp.ge.f32.partialorder %v550_v7, 0.0 }
 0x185   :  { %v777_v9 = vsel %vm649_vm8, %v585_v38, %v713_v56 }
 0x186   :  { %v921_v29 = vmul.f32 %v1719_v35, %v777_v9  ;;  %475 = vperm.xlu1 %1327, %v1741_v36   ;;  %338 = vperm.xlu2 %1322, %v1507_v44   ;;  %v1024_v44 = vsel %vm950_vm3, %v912_v59, 0.0 }
 0x187   :  { %v295_v40 = vpop.permute.xlu2 %294  ;;  %v1025_v54 = vadd.f32 %v1024_v44, %v1701_v1  ;;  %v511_v1 = vrot.slane %v1717_v30, 1 }
 0x188   :  { %v1059_v51 = vsel %vm950_vm3, %v921_v29, 0.0  ;;  %v580_v42 = vadd.f32 %v1708_v8, %v295_v40  ;;  %v1762_v5 = vpop.permute.xlu0 %879  ;;  %v742_v29 = vsel %vm614_vm10, %v550_v7, %v678_v55  ;;  %v570_v7 = vadd.f32 %v1655_v22, %v1714_v18 }
 0x189   :  { %v1753_v63 = vadd.f32 %v1059_v51, %v1058_v17  ;;  %v562_v17 = vadd.f32 %v1608_v20, %v1651_v37  ;;  %v886_v51 = vmul.f32 %v1497_v39, %v742_v29  ;;  %v1777_v59 = vperm.slane %v511_v1, 0 }
 0x18a   :  { %vm644_vm9 = vcmp.ge.f32.partialorder %v580_v42, 0.0  ;;  %v708_v12 = vmul.f32 0.2, %v580_v42  ;;  %v698_v22 = vmul.f32 0.2, %v570_v7  ;;  %vm634_vm2 = vcmp.ge.f32.partialorder %v570_v7, 0.0 }
 0x18b   :  { %vm626_vm13 = vcmp.ge.f32.partialorder %v562_v17, 0.0  ;;  %v690_v20 = vmul.f32 0.2, %v562_v17 }
 0x18c   :  { %v772_v21 = vsel %vm644_vm9, %v580_v42, %v708_v12  ;;  %v750_v42 = vsel %vm622_vm12, %v558_v19, %v686_v23  ;;  %v819_v19 = vperm.slane %v99_v10, 0 }
 0x18d   :  { %v916_v38 = vmul.f32 %v1543_v57, %v772_v21 }
 0x18e   :  { %1329 = vset.pattern.permute.xlu1 %v1461_v26  ;;  %1324 = vset.pattern.permute.xlu2 %v1394_v3 }
 0x18f   :  { %v1026_v32 = vsel %vm950_vm3, %v916_v38, 0.0  ;;  %867 = vperm.xlu2 %1324, %v817_v4   ;;  %v694_v38 = vmul.f32 0.2, %v566_v58 }
 0x190   :  { %v1027_v2 = vadd.f32 %v1026_v32, %v1025_v54  ;;  %v320_v56 = vpop.permute.xlu1 %319 }
 0x191   :  { %v584_v9 = vadd.f32 %v1724_v41, %v320_v56  ;;  %v951_v56 = vsel %vm950_vm3, %v886_v51, 0.0  ;;  %v98_v51 = vrot.slane %v1557_v0, 4 }
 0x193   :  { %vm648_vm11 = vcmp.ge.f32.partialorder %v584_v9, 0.0  ;;  %v712_v27 = vmul.f32 0.2, %v584_v9 }
 0x195   :  { %v776_v13 = vsel %vm648_vm11, %v584_v9, %v712_v27  ;;  %v754_v9 = vsel %vm626_vm13, %v562_v17, %v690_v20  ;;  %v762_v20 = vsel %vm634_vm2, %v570_v7, %v698_v22 }
 0x196   :  { %v920_v40 = vmul.f32 %v1719_v35, %v776_v13  ;;  %388 = vperm.xlu1 %1329, %v1528_v50   ;;  %v758_v13 = vsel %vm630_vm1, %v566_v58, %v694_v38  ;;  %v818_v38 = vperm.slane %v98_v51, 0 }
 0x197   :  { %v264_v12 = vpop.permute.xlu2 %263  ;;  %1326 = vset.pattern.permute.xlu2 %v1458_v25 }
 0x198   :  { %v1028_v37 = vsel %vm950_vm3, %v920_v40, 0.0  ;;  %v575_v16 = vadd.f32 %v1697_v53, %v264_v12  ;;  %v345_v15 = vpop.permute.xlu1 %344  ;;  %v133_v4 = vpop.permute.xlu0 %132  ;;  %v898_v40 = vmul.f32 %v1511_v45, %v754_v9 }
 0x199   :  { %v1029_v21 = vadd.f32 %v1028_v37, %v1027_v2  ;;  %v588_v39 = vadd.f32 %v1777_v59, %v345_v15  ;;  %v554_v44 = vadd.f32 %v1550_v62, %v133_v4  ;;  %v894_v62 = vmul.f32 %v1504_v43, %v750_v42 }
 0x19a   :  { %vm639_vm14 = vcmp.ge.f32.partialorder %v575_v16, 0.0  ;;  %v703_v54 = vmul.f32 0.2, %v575_v16 }
 0x19b   :  { %vm652_vm15 = vcmp.ge.f32.partialorder %v588_v39, 0.0  ;;  %v716_v32 = vmul.f32 0.2, %v588_v39  ;;  %vm618_vm0 = vcmp.ge.f32.partialorder %v554_v44, 0.0  ;;  %v682_v55 = vmul.f32 0.2, %v554_v44 }
 0x19c   :  { %v767_v23 = vsel %vm639_vm14, %v575_v16, %v703_v54  ;;  %v954_v37 = vsel %vm950_vm3, %v894_v62, 0.0  ;;  %v902_v16 = vmul.f32 %v1520_v48, %v758_v13 }
 0x19d   :  { %v911_v18 = vmul.f32 %v1525_v49, %v767_v23  ;;  %v780_v2 = vsel %vm652_vm15, %v588_v39, %v716_v32  ;;  %v746_v1 = vsel %vm618_vm0, %v554_v44, %v682_v55  ;;  %v956_v39 = vsel %vm950_vm3, %v898_v40, 0.0 }
 0x19e   :  { %v924_v27 = vmul.f32 %v1745_v33, %v780_v2  ;;  %v890_v29 = vmul.f32 %v1513_v46, %v746_v1  ;;  %1333 = vset.pattern.permute.xlu1 %v1394_v3  ;;  %v958_v7 = vsel %vm950_vm3, %v902_v16, 0.0 }
 0x19f   :  { %v993_v17 = vsel %vm950_vm3, %v911_v18, 0.0  ;;  %875 = vperm.xlu1 %1333, %v819_v19   ;;  %v289_v10 = vpop.permute.xlu2 %288  ;;  %419 = vperm.xlu2 %1326, %v1634_v14  }
 0x1a0   :  { %v994_v43 = vadd.f32 %v993_v17, %v1737_v28  ;;  %v1030_v42 = vsel %vm950_vm3, %v924_v27, 0.0  ;;  %v952_v12 = vsel %vm950_vm3, %v890_v29, 0.0  ;;  %v579_v46 = vadd.f32 %v1708_v8, %v289_v10 }
 0x1a1   :  { %v1801_v58 = vadd.f32 %v1030_v42, %v1029_v21  ;;  %v953_v45 = vadd.f32 %v952_v12, %v951_v56  ;;  %v906_v28 = vmul.f32 %v1532_v52, %v762_v20 }
 0x1a2   :  { %vm643_vm4 = vcmp.ge.f32.partialorder %v579_v46, 0.0  ;;  %v707_v15 = vmul.f32 0.2, %v579_v46 }
 0x1a3   :  { %v955_v4 = vadd.f32 %v954_v37, %v953_v45  ;;  %v960_v32 = vsel %vm950_vm3, %v906_v28, 0.0 }
 0x1a4   :  { %v771_v44 = vsel %vm643_vm4, %v579_v46, %v707_v15 }
 0x1a5   :  { %v957_v54 = vadd.f32 %v956_v39, %v955_v4  ;;  %v915_v19 = vmul.f32 %v1543_v57, %v771_v44 }
 0x1a7   :  { %v995_v21 = vsel %vm950_vm3, %v915_v19, 0.0  ;;  %1335 = vset.pattern.permute.xlu1 %v1461_v26  ;;  %1328 = vset.pattern.permute.xlu2 %v1394_v3  ;;  %v959_v48 = vadd.f32 %v958_v7, %v957_v54  ;;  %v513_v7 = vrot.slane %v1717_v30, 3 }
 0x1a8   :  { %v996_v55 = vadd.f32 %v995_v21, %v994_v43  ;;  %v258_v56 = vpop.permute.xlu1 %257  ;;  %871 = vperm.xlu2 %1328, %v818_v38  }
 0x1a9   :  { %v961_v52 = vadd.f32 %v960_v32, %v959_v48  ;;  %v574_v9 = vadd.f32 %v1697_v53, %v258_v56 }
 0x1ab   :  { %vm638_vm5 = vcmp.ge.f32.partialorder %v574_v9, 0.0  ;;  %v702_v23 = vmul.f32 0.2, %v574_v9 }
 0x1ad   :  { %v766_v22 = vsel %vm638_vm5, %v574_v9, %v702_v23 }
 0x1ae   :  { %v910_v18 = vmul.f32 %v1525_v49, %v766_v22  ;;  %v512_v49 = vrot.slane %v1717_v30, 2 }
 0x1af   :  { %413 = vperm.xlu1 %1335, %v1634_v14   ;;  %v376_v62 = vpop.permute.xlu2 %375  ;;  %v589_v14 = vadd.f32 %v1777_v59, %v1668_v61 }
 0x1b0   :  { %v962_v2 = vsel %vm950_vm3, %v910_v18, 0.0  ;;  %1330 = vset.pattern.permute.xlu2 %v1458_v25  ;;  %v1827_v29 = vperm.slane %v512_v49, 0  ;;  %v101_v18 = vrot.slane %v1557_v0, 7 }
 0x1b1   :  { %v963_v1 = vadd.f32 %v962_v2, %v961_v52  ;;  %v717_v40 = vmul.f32 0.2, %v589_v14  ;;  %vm653_vm6 = vcmp.ge.f32.partialorder %v589_v14, 0.0 }
 0x1b2   :  { %v593_v17 = vadd.f32 %v1827_v29, %v376_v62 }
 0x1b3   :  { %v781_v42 = vsel %vm653_vm6, %v589_v14, %v717_v40 }
 0x1b4   :  { %v721_v12 = vmul.f32 0.2, %v593_v17  ;;  %v925_v20 = vmul.f32 %v1745_v33, %v781_v42  ;;  %vm657_vm9 = vcmp.ge.f32.partialorder %v593_v17, 0.0 }
 0x1b6   :  { %v1061_v28 = vsel %vm950_vm3, %v925_v20, 0.0 }
 0x1b7   :  { %1338 = vset.pattern.permute.xlu1 %v1454_v24  ;;  %v401_v27 = vpop.permute.xlu2 %400 }
 0x1b8   :  { %444 = vperm.xlu2 %1330, %v1683_v31   ;;  %v1821_v53 = vpop.permute.xlu1 %425 }
 0x1bf   :  { %382 = vperm.xlu1 %1338, %v1528_v50  }
 0x1c0   :  { %1334 = vset.pattern.permute.xlu2 %v1454_v24 }
 0x1c7   :  { %1340 = vset.pattern.permute.xlu1 %v1458_v25  ;;  %v314_v13 = vpop.permute.xlu2 %313 }
 0x1c8   :  { %v583_v10 = vadd.f32 %v1724_v41, %v314_v13  ;;  %v283_v50 = vpop.permute.xlu1 %282  ;;  %357 = vperm.xlu2 %1334, %v1518_v47  }
 0x1c9   :  { %v578_v51 = vadd.f32 %v1708_v8, %v283_v50  ;;  %v785_v8 = vsel %vm657_vm9, %v593_v17, %v721_v12 }
 0x1ca   :  { %vm647_vm7 = vcmp.ge.f32.partialorder %v583_v10, 0.0  ;;  %v711_v43 = vmul.f32 0.2, %v583_v10 }
 0x1cb   :  { %vm642_vm8 = vcmp.ge.f32.partialorder %v578_v51, 0.0  ;;  %v706_v61 = vmul.f32 0.2, %v578_v51 }
 0x1cc   :  { %v775_v46 = vsel %vm647_vm7, %v583_v10, %v711_v43 }
 0x1cd   :  { %v919_v45 = vmul.f32 %v1719_v35, %v775_v46  ;;  %v770_v37 = vsel %vm642_vm8, %v578_v51, %v706_v61 }
 0x1ce   :  { %v914_v16 = vmul.f32 %v1543_v57, %v770_v37  ;;  %v1062_v57 = vadd.f32 %v1061_v28, %v1753_v63 }
 0x1cf   :  { %v997_v47 = vsel %vm950_vm3, %v919_v45, 0.0  ;;  %494 = vperm.xlu1 %1340, %v1548_v60  }
 0x1d0   :  { %v998_v15 = vadd.f32 %v997_v47, %v996_v55  ;;  %v964_v4 = vsel %vm950_vm3, %v914_v16, 0.0  ;;  %1336 = vset.pattern.permute.xlu2 %v1458_v25  ;;  %v1841_v39 = vpop.permute.xlu2 %863  ;;  %v1852_v25 = vperm.slane %v513_v7, 0 }
 0x1d1   :  { %v1844_v44 = vadd.f32 %v964_v4, %v963_v1  ;;  %v929_v38 = vmul.f32 %v1841_v39, %v785_v8 }
 0x1d2   :  { %v597_v48 = vadd.f32 %v1852_v25, %v401_v27  ;;  %v821_v27 = vperm.slane %v101_v18, 0 }
 0x1d3   :  { %v1063_v54 = vsel %vm950_vm3, %v929_v38, 0.0 }
 0x1d4   :  { %v1064_v19 = vadd.f32 %v1063_v54, %v1062_v57  ;;  %v725_v55 = vmul.f32 0.2, %v597_v48  ;;  %vm661_vm11 = vcmp.ge.f32.partialorder %v597_v48, 0.0 }
 0x1d6   :  { %v789_v23 = vsel %vm661_vm11, %v597_v48, %v725_v55  ;;  %v516_v55 = vrot.slane %v1717_v30, 6 }
 0x1d7   :  { %1342 = vset.pattern.permute.xlu1 %v1461_v26 }
 0x1d8   :  { %469 = vperm.xlu2 %1336, %v1741_v36   ;;  %v451_v40 = vpop.permute.xlu1 %450 }
 0x1df   :  { %463 = vperm.xlu1 %1342, %v1741_v36  }
 0x1e0   :  { %1339 = vset.pattern.permute.xlu2 %v1461_v26  ;;  %v339_v21 = vpop.permute.xlu2 %338 }
 0x1e1   :  { %v587_v63 = vadd.f32 %v1777_v59, %v339_v21 }
 0x1e3   :  { %vm651_vm10 = vcmp.ge.f32.partialorder %v587_v63, 0.0  ;;  %v715_v32 = vmul.f32 0.2, %v587_v63 }
 0x1e5   :  { %v779_v56 = vsel %vm651_vm10, %v587_v63, %v715_v32 }
 0x1e6   :  { %v923_v52 = vmul.f32 %v1745_v33, %v779_v56 }
 0x1e7   :  { %488 = vperm.xlu1 %1342, %v1548_v60   ;;  %v514_v60 = vrot.slane %v1717_v30, 4 }
 0x1e8   :  { %v999_v9 = vsel %vm950_vm3, %v923_v52, 0.0  ;;  %438 = vperm.xlu2 %1339, %v1683_v31  }
 0x1e9   :  { %v1862_v26 = vadd.f32 %v999_v9, %v998_v15  ;;  %v1864_v22 = vpop.permute.xlu2 %867  ;;  %v1872_v49 = vperm.slane %v514_v60, 0  ;;  %v1919_v60 = vperm.slane %v516_v55, 0 }
 0x1ea   :  { %v933_v2 = vmul.f32 %v1864_v22, %v789_v23 }
 0x1eb   :  { %v601_v0 = vadd.f32 %v1872_v49, %v1821_v53  ;;  %v308_v53 = vpop.permute.xlu0 %307 }
 0x1ec   :  { %v1065_v1 = vsel %vm950_vm3, %v933_v2, 0.0  ;;  %v582_v20 = vadd.f32 %v1724_v41, %v308_v53 }
 0x1ed   :  { %v1066_v62 = vadd.f32 %v1065_v1, %v1064_v19  ;;  %v729_v13 = vmul.f32 0.2, %v601_v0  ;;  %vm665_vm12 = vcmp.ge.f32.partialorder %v601_v0, 0.0  ;;  %v515_v19 = vrot.slane %v1717_v30, 5 }
 0x1ee   :  { %v710_v37 = vmul.f32 0.2, %v582_v20  ;;  %vm646_vm13 = vcmp.ge.f32.partialorder %v582_v20, 0.0 }
 0x1ef   :  { %1344 = vset.pattern.permute.xlu1 %v1394_v3  ;;  %v793_v17 = vsel %vm665_vm12, %v601_v0, %v729_v13  ;;  %v1911_v52 = vperm.slane %v515_v19, 0 }
 0x1f0   :  { %1341 = vset.pattern.permute.xlu2 %v1394_v3  ;;  %v774_v8 = vsel %vm646_vm13, %v582_v20, %v710_v37 }
 0x1f1   :  { %883 = vperm.xlu2 %1341, %v821_v27   ;;  %v918_v28 = vmul.f32 %v1719_v35, %v774_v8  ;;  %v592_v35 = vadd.f32 %v1827_v29, %v1679_v11  ;;  %v517_v27 = vrot.slane %v1717_v30, 7 }
 0x1f3   :  { %v333_v12 = vpop.permute.xlu0 %332  ;;  %v966_v54 = vsel %vm950_vm3, %v918_v28, 0.0  ;;  %vm656_vm2 = vcmp.ge.f32.partialorder %v592_v35, 0.0 }
 0x1f4   :  { %v586_v16 = vadd.f32 %v1777_v59, %v333_v12  ;;  %v967_v63 = vadd.f32 %v966_v54, %v1844_v44  ;;  %v596_v44 = vadd.f32 %v1852_v25, %v1690_v34 }
 0x1f6   :  { %vm650_vm14 = vcmp.ge.f32.partialorder %v586_v16, 0.0  ;;  %v724_v12 = vmul.f32 0.2, %v596_v44  ;;  %vm660_vm4 = vcmp.ge.f32.partialorder %v596_v44, 0.0 }
 0x1f9   :  { %1343 = vset.pattern.permute.xlu2 %v1454_v24  ;;  %v1875_v14 = vpop.permute.xlu2 %419  ;;  %v1886_v24 = vpop.permute.xlu1 %363 }
 0x1fb   :  { %v408_v4 = vpop.permute.xlu0 %407 }
 0x1fc   :  { %v598_v41 = vadd.f32 %v1872_v49, %v408_v4 }
 0x1fe   :  { %v726_v48 = vmul.f32 0.2, %v598_v41  ;;  %vm662_vm0 = vcmp.ge.f32.partialorder %v598_v41, 0.0 }
 0x200   :  { %v790_v23 = vsel %vm662_vm0, %v598_v41, %v726_v48 }
 0x201   :  { %432 = vperm.xlu2 %1343, %v1683_v31   ;;  %v476_v61 = vpop.permute.xlu1 %475 }
 0x202   :  { %v1880_v10 = vpop.permute.xlu2 %871  ;;  %v609_v37 = vadd.f32 %v1919_v60, %v476_v61 }
 0x203   :  { %v937_v50 = vmul.f32 %v1880_v10, %v793_v17  ;;  %v934_v1 = vmul.f32 %v1880_v10, %v790_v23  ;;  %v605_v17 = vadd.f32 %v1911_v52, %v451_v40 }
 0x204   :  { %vm673_vm9 = vcmp.ge.f32.partialorder %v609_v37, 0.0 }
 0x205   :  { %v1067_v51 = vsel %vm950_vm3, %v937_v50, 0.0  ;;  %v600_v50 = vadd.f32 %v1872_v49, %v1875_v14  ;;  %v974_v20 = vsel %vm950_vm3, %v934_v1, 0.0  ;;  %v733_v14 = vmul.f32 0.2, %v605_v17 }
 0x206   :  { %v1884_v43 = vadd.f32 %v1067_v51, %v1066_v62  ;;  %v720_v62 = vmul.f32 0.2, %v592_v35  ;;  %vm669_vm5 = vcmp.ge.f32.partialorder %v605_v17, 0.0 }
 0x207   :  { %vm664_vm6 = vcmp.ge.f32.partialorder %v600_v50, 0.0  ;;  %v797_v61 = vsel %vm669_vm5, %v605_v17, %v733_v14  ;;  %v1077_v14 = vld [vmem:[%s2049_s3 + $0x10] sm:$0xff] }
 0x209   :  { %457 = vperm.xlu2 %1343, %v1741_v36   ;;  %v1890_v42 = vpop.permute.xlu1 %388 }
 0x211   :  { %1345 = vset.pattern.permute.xlu2 %v1394_v3  ;;  %v1892_v46 = vpop.permute.xlu1 %875  ;;  %v714_v3 = vmul.f32 0.2, %v586_v16 }
 0x212   :  { %v445_v31 = vpop.permute.xlu2 %444 }
 0x213   :  { %v778_v38 = vsel %vm650_vm14, %v586_v16, %v714_v3  ;;  %v604_v51 = vadd.f32 %v1911_v52, %v445_v31  ;;  %v784_v16 = vsel %vm656_vm2, %v592_v35, %v720_v62  ;;  %v788_v3 = vsel %vm660_vm4, %v596_v44, %v724_v12 }
 0x214   :  { %v922_v59 = vmul.f32 %v1745_v33, %v778_v38  ;;  %v928_v8 = vmul.f32 %v1841_v39, %v784_v16  ;;  %v932_v28 = vmul.f32 %v1864_v22, %v788_v3  ;;  %v737_v38 = vmul.f32 0.2, %v609_v37 }
 0x215   :  { %v732_v31 = vmul.f32 0.2, %v604_v51  ;;  %vm668_vm7 = vcmp.ge.f32.partialorder %v604_v51, 0.0 }
 0x216   :  { %v968_v33 = vsel %vm950_vm3, %v922_v59, 0.0  ;;  %v1032_v59 = vsel %vm950_vm3, %v928_v8, 0.0 }
 0x217   :  { %v969_v18 = vadd.f32 %v968_v33, %v967_v63  ;;  %v591_v33 = vadd.f32 %v1827_v29, %v1886_v24 }
 0x219   :  { %vm655_vm12 = vcmp.ge.f32.partialorder %v591_v33, 0.0 }
 0x221   :  { %v1897_v36 = vpop.permute.xlu1 %413 }
 0x222   :  { %v358_v45 = vpop.permute.xlu2 %357 }
 0x223   :  { %v590_v47 = vadd.f32 %v1827_v29, %v358_v45  ;;  %v1928_v45 = vperm.slane %v517_v27, 0  ;;  %v719_v27 = vmul.f32 0.2, %v591_v33 }
 0x225   :  { %v718_v15 = vmul.f32 0.2, %v590_v47  ;;  %vm654_vm15 = vcmp.ge.f32.partialorder %v590_v47, 0.0  ;;  %v613_v4 = vadd.f32 %v1928_v45, %v1704_v6  ;;  %v1034_v6 = vsel %vm950_vm3, %v932_v28, 0.0 }
 0x227   :  { %v782_v57 = vsel %vm654_vm15, %v590_v47, %v718_v15  ;;  %v728_v47 = vmul.f32 0.2, %v600_v50  ;;  %v741_v55 = vmul.f32 0.2, %v613_v4  ;;  %vm677_vm10 = vcmp.ge.f32.partialorder %v613_v4, 0.0 }
 0x228   :  { %v926_v7 = vmul.f32 %v1841_v39, %v782_v57  ;;  %v796_v57 = vsel %vm668_vm7, %v604_v51, %v732_v31 }
 0x229   :  { %v792_v41 = vsel %vm664_vm6, %v600_v50, %v728_v47  ;;  %v940_v35 = vmul.f32 %v1892_v46, %v796_v57  ;;  %v805_v24 = vsel %vm677_vm10, %v613_v4, %v741_v55 }
 0x22a   :  { %v970_v9 = vsel %vm950_vm3, %v926_v7, 0.0  ;;  %v936_v19 = vmul.f32 %v1880_v10, %v792_v41  ;;  %v941_v7 = vmul.f32 %v1892_v46, %v797_v61 }
 0x22b   :  { %v971_v0 = vadd.f32 %v970_v9, %v969_v18  ;;  %v1038_v62 = vsel %vm950_vm3, %v940_v35, 0.0 }
 0x22c   :  { %v1036_v9 = vsel %vm950_vm3, %v936_v19, 0.0  ;;  %v1069_v23 = vsel %vm950_vm3, %v941_v7, 0.0 }
 0x22d   :  { %v1070_v29 = vadd.f32 %v1069_v23, %v1884_v43 }
 0x231   :  { %v383_v21 = vpop.permute.xlu1 %382 }
 0x232   :  { %v594_v32 = vadd.f32 %v1852_v25, %v383_v21  ;;  %v470_v13 = vpop.permute.xlu2 %469 }
 0x233   :  { %v608_v30 = vadd.f32 %v1919_v60, %v470_v13 }
 0x234   :  { %vm658_vm1 = vcmp.ge.f32.partialorder %v594_v32, 0.0  ;;  %v722_v56 = vmul.f32 0.2, %v594_v32 }
 0x235   :  { %v736_v15 = vmul.f32 0.2, %v608_v30  ;;  %vm672_vm8 = vcmp.ge.f32.partialorder %v608_v30, 0.0 }
 0x236   :  { %v786_v2 = vsel %vm658_vm1, %v594_v32, %v722_v56  ;;  %v801_v32 = vsel %vm673_vm9, %v609_v37, %v737_v38  ;;  %v1033_v56 = vadd.f32 %v1032_v59, %v1801_v58  ;;  %v1078_v37 = vld [vmem:[%s2049_s3 + $0x18] sm:$0xff] }
 0x237   :  { %v930_v11 = vmul.f32 %v1864_v22, %v786_v2  ;;  %v800_v48 = vsel %vm672_vm8, %v608_v30, %v736_v15  ;;  %v945_v44 = vmul.f32 %v1762_v5, %v801_v32 }
 0x238   :  { %v944_v18 = vmul.f32 %v1762_v5, %v800_v48  ;;  %v1035_v2 = vadd.f32 %v1034_v6, %v1033_v56 }
 0x239   :  { %v972_v34 = vsel %vm950_vm3, %v930_v11, 0.0  ;;  %v595_v11 = vadd.f32 %v1852_v25, %v1890_v42  ;;  %v1071_v51 = vsel %vm950_vm3, %v945_v44, 0.0  ;;  %v483_v44 = vpop.permute.xlu0 %482 }
 0x23a   :  { %v973_v53 = vadd.f32 %v972_v34, %v971_v0  ;;  %v1037_v58 = vadd.f32 %v1036_v9, %v1035_v2  ;;  %v599_v0 = vadd.f32 %v1872_v49, %v1897_v36  ;;  %v1040_v13 = vsel %vm950_vm3, %v944_v18, 0.0 }
 0x23b   :  { %v723_v42 = vmul.f32 0.2, %v595_v11  ;;  %vm659_vm13 = vcmp.ge.f32.partialorder %v595_v11, 0.0  ;;  %v1072_v12 = vadd.f32 %v1071_v51, %v1070_v29  ;;  %v783_v49 = vsel %vm655_vm12, %v591_v33, %v719_v27 }
 0x23c   :  { %v1931_v40 = vadd.f32 %v974_v20, %v973_v53  ;;  %v1039_v25 = vadd.f32 %v1038_v62, %v1037_v58  ;;  %v727_v36 = vmul.f32 0.2, %v599_v0  ;;  %vm663_vm14 = vcmp.ge.f32.partialorder %v599_v0, 0.0 }
 0x23d   :  { %v787_v8 = vsel %vm659_vm13, %v595_v11, %v723_v42  ;;  %v927_v15 = vmul.f32 %v1841_v39, %v783_v49  ;;  %v610_v29 = vadd.f32 %v1928_v45, %v483_v44 }
 0x23e   :  { %v1041_v20 = vadd.f32 %v1040_v13, %v1039_v25  ;;  %v791_v61 = vsel %vm663_vm14, %v599_v0, %v727_v36  ;;  %v931_v57 = vmul.f32 %v1864_v22, %v787_v8  ;;  %v1076_v13 = vld [vmem:[%s2049_s3 + $0x8] sm:$0xff] }
 0x23f   :  { %v1001_v7 = vsel %vm950_vm3, %v927_v15, 0.0  ;;  %v738_v25 = vmul.f32 0.2, %v610_v29  ;;  %vm674_vm4 = vcmp.ge.f32.partialorder %v610_v29, 0.0 }
 0x240   :  { %v1002_v6 = vadd.f32 %v1001_v7, %v1862_v26 }
 0x241   :  { %v495_v54 = vpop.permute.xlu1 %494 }
 0x242   :  { %v439_v21 = vpop.permute.xlu2 %438  ;;  %v612_v63 = vadd.f32 %v1928_v45, %v495_v54 }
 0x243   :  { %v603_v34 = vadd.f32 %v1911_v52, %v439_v21  ;;  %v935_v21 = vmul.f32 %v1880_v10, %v791_v61 }
 0x244   :  { %v740_v1 = vmul.f32 0.2, %v612_v63  ;;  %vm676_vm11 = vcmp.ge.f32.partialorder %v612_v63, 0.0 }
 0x245   :  { %v731_v3 = vmul.f32 0.2, %v603_v34  ;;  %vm667_vm15 = vcmp.ge.f32.partialorder %v603_v34, 0.0  ;;  %v1005_v32 = vsel %vm950_vm3, %v935_v21, 0.0 }
 0x246   :  { %v804_v17 = vsel %vm676_vm11, %v612_v63, %v740_v1  ;;  %v1003_v63 = vsel %vm950_vm3, %v931_v57, 0.0 }
 0x247   :  { %v795_v19 = vsel %vm667_vm15, %v603_v34, %v731_v3  ;;  %v1004_v56 = vadd.f32 %v1003_v63, %v1002_v6 }
 0x248   :  { %v939_v22 = vmul.f32 %v1892_v46, %v795_v19 }
 0x249   :  { %v1006_v18 = vadd.f32 %v1005_v32, %v1004_v56 }
 0x24a   :  { %v1007_v9 = vsel %vm950_vm3, %v939_v22, 0.0 }
 0x24b   :  { %v1957_v50 = vpop.permute.xlu2 %883  ;;  %v1008_v62 = vadd.f32 %v1007_v9, %v1006_v18 }
 0x24c   :  { %v948_v53 = vmul.f32 %v1957_v50, %v804_v17  ;;  %v949_v43 = vmul.f32 %v1957_v50, %v805_v24 }
 0x24e   :  { %v1073_v30 = vsel %vm950_vm3, %v949_v43, 0.0  ;;  %v1042_v16 = vsel %vm950_vm3, %v948_v53, 0.0 }
 0x24f   :  { %v1074_v47 = vadd.f32 %v1073_v30, %v1072_v12  ;;  %v1043_v31 = vadd.f32 %v1042_v16, %v1041_v20  ;;  %v802_v12 = vsel %vm674_vm4, %v610_v29, %v738_v25  ;;  %v1075_v16 = vld [vmem:[%s2049_s3] sm:$0xff] }
 0x250   :  { %v946_v49 = vmul.f32 %v1957_v50, %v802_v12 }
 0x251   :  { %v464_v4 = vpop.permute.xlu1 %463  ;;  %v1972_v28 = vadd.f32 %v1078_v37, %v1074_v47  ;;  %v1974_v38 = vadd.f32 %v1077_v14, %v1043_v31 }
 0x252   :  { %v607_v41 = vadd.f32 %v1919_v60, %v464_v4  ;;  %v980_v37 = vsel %vm950_vm3, %v946_v49, 0.0 }
 0x253   :  { %v1092_v54 = vsel %vm950_vm3, %v1972_v28, -inf  ;;  %v1089_v59 = vsel %vm950_vm3, %v1974_v38, -inf }
 0x254   :  { %vm671_vm0 = vcmp.ge.f32.partialorder %v607_v41, 0.0  ;;  %v735_v39 = vmul.f32 0.2, %v607_v41  ;;  %1093 = vmax.xlane.f32.xlu1 %v1092_v54  ;;  %1090 = vmax.xlane.f32.xlu2 %v1089_v59 }
 0x256   :  { %v799_v48 = vsel %vm671_vm0, %v607_v41, %v735_v39 }
 0x257   :  { %v943_v35 = vmul.f32 %v1762_v5, %v799_v48 }
 0x259   :  { %v489_v55 = vpop.permute.xlu1 %488  ;;  %v1009_v1 = vsel %vm950_vm3, %v943_v35, 0.0 }
 0x25a   :  { %v611_v33 = vadd.f32 %v1928_v45, %v489_v55  ;;  %v1010_v27 = vadd.f32 %v1009_v1, %v1008_v62 }
 0x25b   :  { %v433_v23 = vpop.permute.xlu2 %432 }
 0x25c   :  { %vm675_vm1 = vcmp.ge.f32.partialorder %v611_v33, 0.0  ;;  %v739_v10 = vmul.f32 0.2, %v611_v33  ;;  %v602_v2 = vadd.f32 %v1911_v52, %v433_v23 }
 0x25e   :  { %v803_v26 = vsel %vm675_vm1, %v611_v33, %v739_v10  ;;  %vm666_vm2 = vcmp.ge.f32.partialorder %v602_v2, 0.0  ;;  %v730_v11 = vmul.f32 0.2, %v602_v2 }
 0x25f   :  { %v947_v58 = vmul.f32 %v1957_v50, %v803_v26 }
 0x260   :  { %v794_v24 = vsel %vm666_vm2, %v602_v2, %v730_v11 }
 0x261   :  { %v1011_v0 = vsel %vm950_vm3, %v947_v58, 0.0  ;;  %v938_v17 = vmul.f32 %v1892_v46, %v794_v24 }
 0x262   :  { %v1012_v52 = vadd.f32 %v1011_v0, %v1010_v27 }
 0x263   :  { %v458_v51 = vpop.permute.xlu2 %457  ;;  %v976_v43 = vsel %vm950_vm3, %v938_v17, 0.0 }
 0x264   :  { %v606_v42 = vadd.f32 %v1919_v60, %v458_v51  ;;  %v1080_v34 = vadd.f32 %v1076_v13, %v1012_v52  ;;  %v977_v46 = vadd.f32 %v976_v43, %v1931_v40 }
 0x266   :  { %vm670_vm5 = vcmp.ge.f32.partialorder %v606_v42, 0.0  ;;  %v734_v53 = vmul.f32 0.2, %v606_v42  ;;  %v1086_v45 = vsel %vm950_vm3, %v1080_v34, -inf }
 0x267   :  { %1087 = vmax.xlane.f32.xlu0 %v1086_v45 }
 0x268   :  { %v798_v20 = vsel %vm670_vm5, %v606_v42, %v734_v53 }
 0x269   :  { %v942_v36 = vmul.f32 %v1762_v5, %v798_v20 }
 0x26b   :  { %v978_v30 = vsel %vm950_vm3, %v942_v36, 0.0 }
 0x26c   :  { %v979_v60 = vadd.f32 %v978_v30, %v977_v46 }
 0x26e   :  { %v981_v14 = vadd.f32 %v980_v37, %v979_v60 }
 0x270   :  { %v1079_v47 = vadd.f32 %v1075_v16, %v981_v14 }
 0x272   :  { %v1083_v31 = vsel %vm950_vm3, %v1079_v47, -inf }
 0x273   :  { %1084 = vmax.xlane.f32.xlu2 %v1083_v31 }
 0x2c7   :  { %v1091_v8 = vpop.xlane.xlu2 %1090  ;;  %v1094_v50 = vpop.xlane.xlu1 %1093 }
 0x2c8   :  { %v1097_v5 = vsub.f32 %v1974_v38, %v1091_v8  ;;  %v1098_v40 = vsub.f32 %v1972_v28, %v1094_v50 }
 0x2ca   :  { %v1103_v3 = vmul.f32 1.442695, %v1097_v5  ;;  %v1105_v15 = vmul.f32 1.442695, %v1098_v40 }
 0x2cc   :  { %1347 = vpow2.f32 %v1103_v3  ;;  %v1367_v3 = vld [vmem:[%s2046_s0] sm:$0xff]  ;;  %s1396_s0 = smov [#allocation2]  }
 0x2cd   :  { %1349 = vpow2.f32 %v1105_v15 }
 0x2d2   :  { %v1348_v4 = vpop.eup %1347 }
 0x2d3   :  { %v1350_v61 = vpop.eup %1349  ;;  %v1113_v41 = vsel %vm950_vm3, %v1348_v4, 0.0 }
 0x2d4   :  { %1114 = vadd.xlane.f32.xlu2 %v1113_v41  ;;  %v1116_v57 = vsel %vm950_vm3, %v1350_v61, 0.0  ;;  %v26_v41 = vld [vmem:[%s2050_s4] sm:$0xff] }
 0x2d5   :  { %1117 = vadd.xlane.f32.xlu1 %v1116_v57  ;;  %v27_v57 = vld [vmem:[%s2050_s4 + $0x8] sm:$0xff]  ;;  %s1261_s4 = sshll.u32 %s1396_s0, 4  ;;  %s1262_s4 = int_to_ptr.vmem [resolvable:$true] %s1261_s4 }
 0x2da   :  { %v1088_v54 = vpop.xlane.xlu0 %1087 }
 0x2db   :  { %v1096_v59 = vsub.f32 %v1080_v34, %v1088_v54 }
 0x2dd   :  { %v1101_v19 = vmul.f32 1.442695, %v1096_v59 }
 0x2df   :  { %1351 = vpow2.f32 %v1101_v19 }
 0x2e5   :  { %v2016_v39 = vpop.eup %1351 }
 0x2e6   :  { %v1085_v38 = vpop.xlane.xlu2 %1084  ;;  %v1110_v28 = vsel %vm950_vm3, %v2016_v39, 0.0 }
 0x2e7   :  { %v1095_v7 = vsub.f32 %v1079_v47, %v1085_v38  ;;  %1111 = vadd.xlane.f32.xlu0 %v1110_v28 }
 0x2e9   :  { %v1099_v21 = vmul.f32 1.442695, %v1095_v7 }
 0x2eb   :  { %1353 = vpow2.f32 %v1099_v21 }
 0x2f1   :  { %v2020_v48 = vpop.eup %1353 }
 0x2f2   :  { %v1107_v63 = vsel %vm950_vm3, %v2020_v48, 0.0 }
 0x2f3   :  { %1108 = vadd.xlane.f32.xlu1 %v1107_v63 }
 0x30c   :  { %1245 = vperm.xlu1 %1344, %v26_v41  }
 0x347   :  { %v1115_v22 = vpop.xlane.xlu2 %1114 }
 0x348   :  { %1355 = vrcp.f32 %v1115_v22  ;;  %v1118_v6 = vpop.xlane.xlu1 %1117  ;;  %vm1154_vm8 = vweird.f32 %v1115_v22  ;;  %v1160_v44 = vand.u32 2147483648, %v1115_v22  ;;  %v1158_v11 = vand.u32 2147483647, %v1115_v22 }
 0x349   :  { %1357 = vrcp.f32 %v1118_v6  ;;  %v1175_v18 = vand.u32 2147483648, %v1118_v6  ;;  %v1173_v2 = vand.u32 2147483647, %v1118_v6  ;;  %vm1169_vm9 = vweird.f32 %v1118_v6 }
 0x34a   :  { %v1161_v24 = vor.u32 1.1754944e-38, %v1160_v44  ;;  %vm1159_vm13 = vcmp.eq.f32.partialorder %v1158_v11, 8.507059e+37 }
 0x34b   :  { %v1176_v62 = vor.u32 1.1754944e-38, %v1175_v18  ;;  %vm1174_vm12 = vcmp.eq.f32.partialorder %v1173_v2, 8.507059e+37 }
 0x34e   :  { %v1356_v32 = vpop.eup %1355 }
 0x34f   :  { %v1358_v35 = vpop.eup %1357  ;;  %v1150_v55 = vmul.f32 %v1356_v32, %v1115_v22  ;;  %vm1155_vm6 = vweird.f32 %v1356_v32 }
 0x350   :  { %v1165_v56 = vmul.f32 %v1358_v35, %v1118_v6  ;;  %vm1170_vm7 = vweird.f32 %v1358_v35  ;;  %vm1156_vm10 = vmor %vm1154_vm8, %vm1155_vm6 }
 0x351   :  { %v1151_v33 = vsub.f32 1.0, %v1150_v55  ;;  %vm1171_vm11 = vmor %vm1169_vm9, %vm1170_vm7 }
 0x352   :  { %v1166_v9 = vsub.f32 1.0, %v1165_v56 }
 0x353   :  { %v1152_v23 = vmul.f32 %v1356_v32, %v1151_v33 }
 0x354   :  { %v1167_v10 = vmul.f32 %v1358_v35, %v1166_v9 }
 0x355   :  { %v1153_v1 = vadd.f32 %v1356_v32, %v1152_v23 }
 0x356   :  { %v1168_v26 = vadd.f32 %v1358_v35, %v1167_v10 }
 0x357   :  { %v1157_v29 = vsel %vm1156_vm10, %v1356_v32, %v1153_v1 }
 0x358   :  { %v1172_v58 = vsel %vm1171_vm11, %v1358_v35, %v1168_v26  ;;  %v1162_v52 = vsel %vm1159_vm13, %v1161_v24, %v1157_v29 }
 0x359   :  { %v1177_v27 = vsel %vm1174_vm12, %v1176_v62, %v1172_v58  ;;  %v1163_v17 = vmul.f32 %v1348_v4, %v1162_v52 }
 0x35a   :  { %v1112_v0 = vpop.xlane.xlu0 %1111  ;;  %v1178_v13 = vmul.f32 %v1350_v61, %v1177_v27  ;;  %v1395_v61 = vmov 32.0  }
 0x35b   :  { %1359 = vrcp.f32 %v1112_v0  ;;  %v1145_v34 = vand.u32 2147483648, %v1112_v0  ;;  %v1143_v43 = vand.u32 2147483647, %v1112_v0  ;;  %vm1139_vm15 = vweird.f32 %v1112_v0 }
 0x35c   :  { %1276 = vmatpush.xpose.msk.msra.mxu1 %vm950_vm3, %v1178_v13 }
 0x35d   :  { %v1146_v20 = vor.u32 1.1754944e-38, %v1145_v34  ;;  %vm1144_vm1 = vcmp.eq.f32.partialorder %v1143_v43, 8.507059e+37 }
 0x360   :  { %1277 = vmatpush.xpose.msk.msra.mxu1 %vm950_vm3, %v1163_v17 }
 0x361   :  { %v1360_v51 = vpop.eup %1359 }
 0x362   :  { %v1135_v25 = vmul.f32 %v1360_v51, %v1112_v0  ;;  %vm1140_vm14 = vweird.f32 %v1360_v51 }
 0x363   :  { %vm1141_vm0 = vmor %vm1139_vm15, %vm1140_vm14 }
 0x364   :  { %v1136_v42 = vsub.f32 1.0, %v1135_v25 }
 0x366   :  { %v1137_v53 = vmul.f32 %v1360_v51, %v1136_v42  ;;  %v1109_v45 = vpop.xlane.xlu1 %1108 }
 0x367   :  { %1361 = vrcp.f32 %v1109_v45  ;;  %v1130_v16 = vand.u32 2147483648, %v1109_v45  ;;  %v1128_v47 = vand.u32 2147483647, %v1109_v45  ;;  %vm1124_vm4 = vweird.f32 %v1109_v45 }
 0x368   :  { %v1138_v12 = vadd.f32 %v1360_v51, %v1137_v53  ;;  %1363 = vrcp.f32 %v1395_v61 }
 0x369   :  { %v1131_v8 = vor.u32 1.1754944e-38, %v1130_v16  ;;  %vm1129_vm6 = vcmp.eq.f32.partialorder %v1128_v47, 8.507059e+37 }
 0x36a   :  { %v1142_v49 = vsel %vm1141_vm0, %v1360_v51, %v1138_v12 }
 0x36b   :  { %v1147_v36 = vsel %vm1144_vm1, %v1146_v20, %v1142_v49 }
 0x36c   :  { %v1148_v46 = vmul.f32 %v2016_v39, %v1147_v36 }
 0x36d   :  { %v1362_v30 = vpop.eup %1361 }
 0x36e   :  { %v1120_v60 = vmul.f32 %v1362_v30, %v1109_v45  ;;  %1278 = vmatpush.xpose.msk.msra.mxu1 %vm950_vm3, %v1148_v46  ;;  %vm1125_vm2 = vweird.f32 %v1362_v30  ;;  %v1364_v54 = vpop.eup %1363 }
 0x36f   :  { %vm1126_vm5 = vmor %vm1124_vm4, %vm1125_vm2  ;;  %v1218_v59 = vmul.f32 32.0, %v1364_v54  ;;  %vm1222_vm7 = vweird.f32 %v1364_v54 }
 0x370   :  { %v1121_v37 = vsub.f32 1.0, %v1120_v60 }
 0x371   :  { %v1219_v19 = vsub.f32 1.0, %v1218_v59 }
 0x372   :  { %v1122_v14 = vmul.f32 %v1362_v30, %v1121_v37 }
 0x373   :  { %v1220_v39 = vmul.f32 %v1364_v54, %v1219_v19 }
 0x374   :  { %v1123_v31 = vadd.f32 %v1362_v30, %v1122_v14 }
 0x375   :  { %v1221_v38 = vadd.f32 %v1364_v54, %v1220_v39 }
 0x376   :  { %v1127_v50 = vsel %vm1126_vm5, %v1362_v30, %v1123_v31 }
 0x377   :  { %v1132_v5 = vsel %vm1129_vm6, %v1131_v8, %v1127_v50  ;;  %v1223_v28 = vsel %vm1222_vm7, %v1364_v54, %v1221_v38 }
 0x378   :  { %v1133_v40 = vmul.f32 %v2020_v48, %v1132_v5 }
 0x37a   :  { %1279 = vmatpush.xpose.msk.msra.mxu1 %vm950_vm3, %v1133_v40 }
 0x37d   :  { %1280 = vmatmul.msk.f32.vlgmr.msra.gmra.mxu1 %vm950_vm3, %v1367_v3 }
 0x37e   :  { %v1246_v2 = vpop.permute.xlu1 %1245 }
 0x3fa   :  { %v1211_v15 = vpop.f32.mrf.mxu1 }
 0x3fb   :  { %v1214_v4 = vsel %vm950_vm3, %v1211_v15, 0.0 }
 0x3fc   :  { %1215 = vadd.xlane.f32.xlu2 %v1214_v4 }
 0x414   :  { %1251 = vperm.xlu2 %1345, %v27_v57  }
 0x46f   :  { %v1216_v7 = vpop.xlane.xlu2 %1215 }
 0x470   :  { %v1224_v21 = vmul.f32 %v1223_v28, %v1216_v7 }
 0x472   :  { %v1225_v48 = vsub.f32 %v1211_v15, %v1224_v21 }
 0x474   :  { %v1226_v63 = vmul.f32 %v1225_v48, %v1225_v48 }
 0x476   :  { %v1227_v22 = vsel %vm950_vm3, %v1226_v63, 0.0 }
 0x477   :  { %1228 = vadd.xlane.f32.xlu0 %v1227_v22  ;;  %v1252_v1 = vpop.permute.xlu2 %1251 }
 0x4ea   :  { %v1229_v6 = vpop.xlane.xlu0 %1228 }
 0x4eb   :  { %v1230_v32 = vmul.f32 %v1229_v6, %v1223_v28 }
 0x4ed   :  { %v1231_v35 = vadd.f32 1e-05, %v1230_v32 }
 0x4ef   :  { %1365 = vrsqrt.f32 %v1231_v35  ;;  %vm1238_vm9 = vweird.f32 %v1231_v35 }
 0x4f5   :  { %v1366_v55 = vpop.eup %1365 }
 0x4f6   :  { %v1233_v56 = vmul.f32 %v1366_v55, %v1231_v35  ;;  %vm1239_vm8 = vweird.f32 %v1366_v55 }
 0x4f7   :  { %vm1240_vm10 = vmor %vm1238_vm9, %vm1239_vm8 }
 0x4f8   :  { %v1234_v33 = vmul.f32 %v1366_v55, %v1233_v56 }
 0x4fa   :  { %v1235_v9 = vmul.f32 0.5, %v1234_v33 }
 0x4fc   :  { %v1236_v23 = vsub.f32 1.5, %v1235_v9 }
 0x4fe   :  { %v1237_v18 = vmul.f32 %v1366_v55, %v1236_v23 }
 0x500   :  { %v1241_v10 = vsel %vm1240_vm10, %v1366_v55, %v1237_v18 }
 0x501   :  { %v1242_v44 = vmul.f32 %v1241_v10, %v1225_v48 }
 0x503   :  { %v1248_v26 = vmul.f32 %v1246_v2, %v1242_v44 }
 0x505   :  { %v1254_v11 = vadd.f32 %v1252_v1, %v1248_v26 }
 0x507   :  { %1255 = vst.msk [vmem:[#allocation2] sm:$0xff] %vm950_vm3, %v1254_v11 }
 0x508   :  { %1266 = dma.vmem_to_hbm [thread:$0]  %s1262_s4, 128, %s1264_s24, [#allocation3]  }
 0x509   :  { %1392 = dma.done.wait [#allocation3], 128  }
 0x50a   :  { %1393 = vsyncadd [#allocation3], 4294967168 }
 0x50b   :  { %1271 = vsyncpa [#allocation3], 1 }

</bundles_post_ra>
